<compile_context>
chip_gen: v5e
topology: v5e:2x2
jax: 0.10.0
libtpu: 0.0.40
codegen_flags: <defaults>
</compile_context>

<pallas_src>
import jax
import jax.numpy as jnp
from jax import lax
from jax.experimental import pallas as pl
from jax.experimental.pallas import tpu as pltpu


def _round_up(x, m):
    return (x + m - 1) // m * m


def _choose_block_m(batch, cap):
    """Batch-tile rows: single tile up to `cap`, else an even tile count."""
    bp = _round_up(batch, 128)                  # lane-aligned batch
    if bp <= cap:
        return bp                               # one step: no per-step overhead
    num_tiles = pl.cdiv(bp, cap)
    num_tiles += num_tiles % 2                  # even split helps v7x's 2 TCs
    return _round_up(pl.cdiv(bp, num_tiles), 128)


def ranknet_kernel(x1_ref, x2_ref, w1_ref, b1_ref, w2_ref, b2_ref, w3_ref,
                   out_ref):
    w1 = w1_ref[...]                            # (in, hid)
    b1 = b1_ref[...]                            # (1, hid)
    w2 = w2_ref[...]                            # (hid, hid)
    b2 = b2_ref[...]                            # (1, hid)

    def tower(x):
        h = jnp.dot(x, w1, preferred_element_type=jnp.float32)
        h = jnp.maximum(h + b1, 0.0)
        h = jnp.dot(h, w2, preferred_element_type=jnp.float32)
        return jnp.maximum(h + b2, 0.0)

    # Per-tower matmuls (MXU is idle; weights are tiny) -- no concat copy.
    diff_h = tower(x1_ref[...]) - tower(x2_ref[...])            # (bm, hid) f32

    # Head fold: score(x1) - score(x2) == (h1 - h2) @ w3  (output bias cancels).
    # NT matmul with w3 broadcast to 8 rows -> lane-dense (8, bm); keep row 0.
    s8 = lax.dot_general(w3_ref[...], diff_h,
                         (((1,), (1,)), ((), ())),
                         preferred_element_type=jnp.float32)    # (8, bm)
    out_ref[...] = s8[0:1, :]                                   # (1, bm)


def ranknet_forward(x1, x2, params, *, block_m_cap=4096):
    """RankNet forward: score(x1) - score(x2), returned as (B, 1) float32.

    params = (w1, b1, w2, b2, w3, b3) with PyTorch nn.Linear shapes:
      w1 (hid, in), b1 (hid,), w2 (hid, hid), b2 (hid,), w3 (1, hid), b3 (1,)
    """
    w1, b1, w2, b2, w3, _b3 = params            # b3 cancels in the difference
    B, in_dim = x1.shape
    assert x2.shape == (B, in_dim)
    hid = w1.shape[0]

    # Weights are tiny: keep them f32 (exact), pre-transposed for row-major x.
    w1t = jnp.asarray(w1, jnp.float32).T                         # (in, hid)
    w2t = jnp.asarray(w2, jnp.float32).T                         # (hid, hid)
    b1r = jnp.asarray(b1, jnp.float32).reshape(1, hid)
    b2r = jnp.asarray(b2, jnp.float32).reshape(1, hid)
    w3b = jnp.broadcast_to(jnp.asarray(w3, jnp.float32).reshape(1, hid),
                           (8, hid))                             # 8-row head

    bm = _choose_block_m(B, block_m_cap)
    num_tiles = pl.cdiv(B, bm)
    Bp = num_tiles * bm

    x_spec = pl.BlockSpec((bm, in_dim), lambda i: (i, 0))

    def full(a):
        return pl.BlockSpec(a.shape, lambda i, nd=a.ndim: (0,) * nd)

    out = pl.pallas_call(
        ranknet_kernel,
        out_shape=jax.ShapeDtypeStruct((1, Bp), jnp.float32),    # lane-dense
        grid=(num_tiles,),
        in_specs=[
            x_spec, x_spec,
            full(w1t), full(b1r),
            full(w2t), full(b2r),
            full(w3b),
        ],
        out_specs=pl.BlockSpec((1, bm), lambda i: (0, i)),
        compiler_params=pltpu.CompilerParams(
            dimension_semantics=("parallel",),
            vmem_limit_bytes=32 * 1024 * 1024),
    )(x1, x2, w1t, b1r, w2t, b2r, w3b)

    return out[0, :B].reshape(B, 1)


def init_params(key, input_size, hidden_size):
    """Deterministic synthetic parameters with PyTorch nn.Linear shapes."""
    k1, k2, k3, k4, k5, k6 = jax.random.split(key, 6)
    w1 = jax.random.normal(k1, (hidden_size, input_size), jnp.float32) * 0.1
    b1 = jax.random.normal(k2, (hidden_size,), jnp.float32) * 0.1
    w2 = jax.random.normal(k3, (hidden_size, hidden_size), jnp.float32) * 0.1
    b2 = jax.random.normal(k4, (hidden_size,), jnp.float32) * 0.1
    w3 = jax.random.normal(k5, (1, hidden_size), jnp.float32) * 0.1
    b3 = jax.random.normal(k6, (1,), jnp.float32) * 0.1
    return (w1, b1, w2, b2, w3, b3)


def ranknet_reference(x1, x2, params):
    """Plain-JAX f32 reference mirroring the PyTorch forward exactly."""
    w1, b1, w2, b2, w3, b3 = params

    def score(x):
        h = jnp.maximum(x @ w1.T + b1, 0.0)
        h = jnp.maximum(h @ w2.T + b2, 0.0)
        return h @ w3.T + b3

    return score(x1) - score(x2)


if __name__ == "__main__":
    # Small shapes consistent with the module: hidden_size=16, input_size=32.
    # batch=300 is deliberately NOT a multiple of 128 to exercise the padless
    # ragged-tail handling.
    batch = 300
    input_size = 32
    hidden_size = 16

    key = jax.random.PRNGKey(0)
    kx1, kx2, kp = jax.random.split(key, 3)

    x1 = jax.random.normal(kx1, (batch, input_size), jnp.float32)
    x2 = jax.random.normal(kx2, (batch, input_size), jnp.float32)
    params = init_params(kp, input_size, hidden_size)

    ref = ranknet_reference(x1, x2, params)

    # Default config: single large tile.
    out = jax.block_until_ready(jax.jit(ranknet_forward)(x1, x2, params))
    assert out.shape == (batch, 1), out.shape
    err = float(jnp.max(jnp.abs(out - ref)))
    assert jnp.allclose(out, ref, atol=1e-2, rtol=1e-2), err

    # Small cap -> multi-tile grid with a ragged last tile (exercises the
    # pipelined path used for large batches).
    out2 = jax.block_until_ready(
        ranknet_forward(x1, x2, params, block_m_cap=128))
    err2 = float(jnp.max(jnp.abs(out2 - ref)))
    assert jnp.allclose(out2, ref, atol=1e-2, rtol=1e-2), err2

    print("KERNEL_OK")
</pallas_src>

<mosaic_0001>
module attributes {stable_mosaic.version = 11 : i64} {
  func.func @ranknet_kernel(%arg0: i32, %arg1: memref<384x32xf32, #tpu.memory_space<vmem>>, %arg2: memref<384x32xf32, #tpu.memory_space<vmem>>, %arg3: memref<32x16xf32, #tpu.memory_space<vmem>>, %arg4: memref<1x16xf32, #tpu.memory_space<vmem>>, %arg5: memref<16x16xf32, #tpu.memory_space<vmem>>, %arg6: memref<1x16xf32, #tpu.memory_space<vmem>>, %arg7: memref<8x16xf32, #tpu.memory_space<vmem>>, %arg8: memref<1x384xf32, #tpu.memory_space<vmem>>) attributes {dimension_semantics = [#tpu.dimension_semantics<parallel>], iteration_bounds = array<i64: 1>, scalar_prefetch = 0 : i64, scratch_operands = 0 : i64, tpu.core_type = #tpu.core_type<tc>, window_params = [{transform_indices = @transform_0, window_bounds = array<i64: 384, 32>}, {transform_indices = @transform_1, window_bounds = array<i64: 384, 32>}, {pipeline_mode = #tpu.pipeline_mode<synchronous>, transform_indices = @transform_2, window_bounds = array<i64: 32, 16>}, {pipeline_mode = #tpu.pipeline_mode<synchronous>, transform_indices = @transform_3, window_bounds = array<i64: 1, 16>}, {pipeline_mode = #tpu.pipeline_mode<synchronous>, transform_indices = @transform_4, window_bounds = array<i64: 16, 16>}, {pipeline_mode = #tpu.pipeline_mode<synchronous>, transform_indices = @transform_5, window_bounds = array<i64: 1, 16>}, {pipeline_mode = #tpu.pipeline_mode<synchronous>, transform_indices = @transform_6, window_bounds = array<i64: 8, 16>}, {transform_indices = @transform_7, window_bounds = array<i64: 1, 384>}]} {
    %c0 = arith.constant 0 : index
    %c0_0 = arith.constant 0 : index
    %0 = vector.load %arg3[%c0, %c0_0] : memref<32x16xf32, #tpu.memory_space<vmem>>, vector<32x16xf32>
    %c0_1 = arith.constant 0 : index
    %c0_2 = arith.constant 0 : index
    %1 = vector.load %arg4[%c0_1, %c0_2] : memref<1x16xf32, #tpu.memory_space<vmem>>, vector<1x16xf32>
    %c0_3 = arith.constant 0 : index
    %c0_4 = arith.constant 0 : index
    %2 = vector.load %arg5[%c0_3, %c0_4] : memref<16x16xf32, #tpu.memory_space<vmem>>, vector<16x16xf32>
    %c0_5 = arith.constant 0 : index
    %c0_6 = arith.constant 0 : index
    %3 = vector.load %arg6[%c0_5, %c0_6] : memref<1x16xf32, #tpu.memory_space<vmem>>, vector<1x16xf32>
    %c0_7 = arith.constant 0 : index
    %c0_8 = arith.constant 0 : index
    %4 = vector.load %arg1[%c0_7, %c0_8] : memref<384x32xf32, #tpu.memory_space<vmem>>, vector<384x32xf32>
    %cst = arith.constant dense<0.000000e+00> : vector<384x16xf32>
    %5 = tpu.matmul %4, %0, %cst {dimension_numbers = #tpu.dot_dimension_numbers<[1], [0], [0], [1], [0, 0, 1, 1], [], []>} : vector<384x32xf32>, vector<32x16xf32>, vector<384x16xf32> -> vector<384x16xf32>
    %6 = vector.broadcast %1 : vector<1x16xf32> to vector<384x16xf32>
    %7 = arith.addf %5, %6 : vector<384x16xf32>
    %cst_9 = arith.constant 0.000000e+00 : f32
    %8 = vector.broadcast %cst_9 : f32 to vector<384x16xf32>
    %9 = arith.maximumf %7, %8 : vector<384x16xf32>
    %cst_10 = arith.constant dense<0.000000e+00> : vector<384x16xf32>
    %10 = tpu.matmul %9, %2, %cst_10 {dimension_numbers = #tpu.dot_dimension_numbers<[1], [0], [0], [1], [0, 0, 1, 1], [], []>} : vector<384x16xf32>, vector<16x16xf32>, vector<384x16xf32> -> vector<384x16xf32>
    %11 = vector.broadcast %3 : vector<1x16xf32> to vector<384x16xf32>
    %12 = arith.addf %10, %11 : vector<384x16xf32>
    %cst_11 = arith.constant 0.000000e+00 : f32
    %13 = vector.broadcast %cst_11 : f32 to vector<384x16xf32>
    %14 = arith.maximumf %12, %13 : vector<384x16xf32>
    %c0_12 = arith.constant 0 : index
    %c0_13 = arith.constant 0 : index
    %15 = vector.load %arg2[%c0_12, %c0_13] : memref<384x32xf32, #tpu.memory_space<vmem>>, vector<384x32xf32>
    %cst_14 = arith.constant dense<0.000000e+00> : vector<384x16xf32>
    %16 = tpu.matmul %15, %0, %cst_14 {dimension_numbers = #tpu.dot_dimension_numbers<[1], [0], [0], [1], [0, 0, 1, 1], [], []>} : vector<384x32xf32>, vector<32x16xf32>, vector<384x16xf32> -> vector<384x16xf32>
    %17 = vector.broadcast %1 : vector<1x16xf32> to vector<384x16xf32>
    %18 = arith.addf %16, %17 : vector<384x16xf32>
    %cst_15 = arith.constant 0.000000e+00 : f32
    %19 = vector.broadcast %cst_15 : f32 to vector<384x16xf32>
    %20 = arith.maximumf %18, %19 : vector<384x16xf32>
    %cst_16 = arith.constant dense<0.000000e+00> : vector<384x16xf32>
    %21 = tpu.matmul %20, %2, %cst_16 {dimension_numbers = #tpu.dot_dimension_numbers<[1], [0], [0], [1], [0, 0, 1, 1], [], []>} : vector<384x16xf32>, vector<16x16xf32>, vector<384x16xf32> -> vector<384x16xf32>
    %22 = vector.broadcast %3 : vector<1x16xf32> to vector<384x16xf32>
    %23 = arith.addf %21, %22 : vector<384x16xf32>
    %cst_17 = arith.constant 0.000000e+00 : f32
    %24 = vector.broadcast %cst_17 : f32 to vector<384x16xf32>
    %25 = arith.maximumf %23, %24 : vector<384x16xf32>
    %26 = arith.subf %14, %25 : vector<384x16xf32>
    %c0_18 = arith.constant 0 : index
    %c0_19 = arith.constant 0 : index
    %27 = vector.load %arg7[%c0_18, %c0_19] : memref<8x16xf32, #tpu.memory_space<vmem>>, vector<8x16xf32>
    %cst_20 = arith.constant dense<0.000000e+00> : vector<8x384xf32>
    %28 = tpu.matmul %27, %26, %cst_20 {dimension_numbers = #tpu.dot_dimension_numbers<[1], [1], [0], [0], [0, 0, 1, 0], [], []>} : vector<8x16xf32>, vector<384x16xf32>, vector<8x384xf32> -> vector<8x384xf32>
    %29 = vector.extract_strided_slice %28 {offsets = [0, 0], sizes = [1, 384], strides = [1, 1]} : vector<8x384xf32> to vector<1x384xf32>
    %c0_21 = arith.constant 0 : index
    %c0_22 = arith.constant 0 : index
    %30 = vector.load %arg8[%c0_21, %c0_22] : memref<1x384xf32, #tpu.memory_space<vmem>>, vector<1x384xf32>
    tpu.vector_store %arg8[%c0_21, %c0_22], %29 {strides = array<i32>} : memref<1x384xf32, #tpu.memory_space<vmem>>, vector<1x384xf32>,
    return
  }
  func.func @transform_0(%arg0: i32) -> (i32, i32) {
    %c0_i32 = arith.constant 0 : i32
    %c0_i32_0 = arith.constant 0 : i32
    return %arg0, %c0_i32 : i32, i32
  }
  func.func @transform_1(%arg0: i32) -> (i32, i32) {
    %c0_i32 = arith.constant 0 : i32
    %c0_i32_0 = arith.constant 0 : i32
    return %arg0, %c0_i32 : i32, i32
  }
  func.func @transform_2(%arg0: i32) -> (i32, i32) {
    %c0_i32 = arith.constant 0 : i32
    %c0_i32_0 = arith.constant 0 : i32
    %c0_i32_1 = arith.constant 0 : i32
    return %c0_i32, %c0_i32_0 : i32, i32
  }
  func.func @transform_3(%arg0: i32) -> (i32, i32) {
    %c0_i32 = arith.constant 0 : i32
    %c0_i32_0 = arith.constant 0 : i32
    %c0_i32_1 = arith.constant 0 : i32
    return %c0_i32, %c0_i32_0 : i32, i32
  }
  func.func @transform_4(%arg0: i32) -> (i32, i32) {
    %c0_i32 = arith.constant 0 : i32
    %c0_i32_0 = arith.constant 0 : i32
    %c0_i32_1 = arith.constant 0 : i32
    return %c0_i32, %c0_i32_0 : i32, i32
  }
  func.func @transform_5(%arg0: i32) -> (i32, i32) {
    %c0_i32 = arith.constant 0 : i32
    %c0_i32_0 = arith.constant 0 : i32
    %c0_i32_1 = arith.constant 0 : i32
    return %c0_i32, %c0_i32_0 : i32, i32
  }
  func.func @transform_6(%arg0: i32) -> (i32, i32) {
    %c0_i32 = arith.constant 0 : i32
    %c0_i32_0 = arith.constant 0 : i32
    %c0_i32_1 = arith.constant 0 : i32
    return %c0_i32, %c0_i32_0 : i32, i32
  }
  func.func @transform_7(%arg0: i32) -> (i32, i32) {
    %c0_i32 = arith.constant 0 : i32
    %c0_i32_0 = arith.constant 0 : i32
    return %c0_i32, %arg0 : i32, i32
  }
}

</mosaic_0001>

<bundles_post_ra>
// kernel: ranknet_forward.1
= control target key start
LH: loop header
LB: loop body
LE: loop exit
PB: predicated region body
PF: predicated region fallthrough
CT: control target
= control target key end

     0   :  { %vm85_vm0 = vcmask 261120   ;;  %vm442_vm1 = vcmask 130048   ;;  %vm1811_vm2 = vcmask 1040384   ;;  %vm1813_vm3 = vcmask 1041408   ;;  %s3041_s2 = inlined_call_operand.vmem [shape: f32[32,16], index: 2, kind: input, shape index: {}]   ;;  %s3042_s1 = inlined_call_operand.vmem [shape: f32[300,32], index: 1, kind: input, shape index: {}]   ;;  %s3043_s0 = inlined_call_operand.vmem [shape: f32[300,32], index: 0, kind: input, shape index: {}]   ;;  %s3044_s3 = inlined_call_operand.vmem [shape: f32[1,16], index: 3, kind: input, shape index: {}]   ;;  %s3045_s4 = inlined_call_operand.vmem [shape: f32[16,16], index: 4, kind: input, shape index: {}]   ;;  %s3046_s5 = inlined_call_operand.vmem [shape: f32[1,16], index: 5, kind: input, shape index: {}]   ;;  %s3047_s6 = inlined_call_operand.vmem [shape: f32[8,16], index: 6, kind: input, shape index: {}]   ;;  %s3048_s7 = inlined_call_operand.vmem [shape: f32[1,384], index: 7, kind: output, shape index: {}]  }
   0x1   :  { %v29_v0 = vld [vmem:[%s3041_s2 + $0x18] sm:$0xff]  ;;  %v28_v1 = vld [vmem:[%s3041_s2 + $0x10] sm:$0xff]  ;;  %v27_v2 = vld [vmem:[%s3041_s2 + $0x8] sm:$0xff] }
   0x2   :  { %1000 = vmatpush.msra.mxu2 %v29_v0  ;;  %242 = vmatpush.msra.mxu0 %v29_v0  ;;  %v26_v3 = vld [vmem:[%s3041_s2] sm:$0xff]  ;;  %v797_v6 = vld [vmem:[%s3042_s1 + $0x8] sm:$0xff]  ;;  %v798_v8 = vld [vmem:[%s3042_s1 + $0x10] sm:$0xff] }
   0x3   :  { %v796_v4 = vld [vmem:[%s3042_s1] sm:$0xff]  ;;  %v35_v7 = vld [vmem:[%s3043_s0 + $0x8] sm:$0xff]  ;;  %v36_v9 = vld [vmem:[%s3043_s0 + $0x10] sm:$0xff] }
   0x4   :  { %1001 = vmatpush.msra.mxu2 %v28_v1  ;;  %243 = vmatpush.msra.mxu0 %v28_v1  ;;  %v34_v5 = vld [vmem:[%s3043_s0] sm:$0xff]  ;;  %v799_v10 = vld [vmem:[%s3042_s1 + $0x18] sm:$0xff]  ;;  %v801_v14 = vld [vmem:[%s3042_s1 + $0x28] sm:$0xff] }
   0x5   :  { %v37_v11 = vld [vmem:[%s3043_s0 + $0x18] sm:$0xff]  ;;  %v800_v12 = vld [vmem:[%s3042_s1 + $0x20] sm:$0xff]  ;;  %v39_v15 = vld [vmem:[%s3043_s0 + $0x28] sm:$0xff] }
   0x6   :  { %1002 = vmatpush.msra.mxu2 %v27_v2  ;;  %244 = vmatpush.msra.mxu0 %v27_v2  ;;  %v38_v13 = vld [vmem:[%s3043_s0 + $0x20] sm:$0xff]  ;;  %v802_v16 = vld [vmem:[%s3042_s1 + $0x30] sm:$0xff]  ;;  %v803_v18 = vld [vmem:[%s3042_s1 + $0x38] sm:$0xff] }
   0x7   :  { %v40_v17 = vld [vmem:[%s3043_s0 + $0x30] sm:$0xff]  ;;  %v41_v19 = vld [vmem:[%s3043_s0 + $0x38] sm:$0xff]  ;;  %v804_v20 = vld [vmem:[%s3042_s1 + $0x40] sm:$0xff] }
   0x8   :  { %1003 = vmatpush.msra.mxu2 %v26_v3  ;;  %245 = vmatpush.msra.mxu0 %v26_v3  ;;  %v42_v21 = vld [vmem:[%s3043_s0 + $0x40] sm:$0xff]  ;;  %v805_v22 = vld [vmem:[%s3042_s1 + $0x48] sm:$0xff]  ;;  %v806_v24 = vld [vmem:[%s3042_s1 + $0x50] sm:$0xff] }
   0x9   :  { %1921 = vmatmul.msk.f32.vlgmr.msra.gmra.mxu2 %vm85_vm0, %v796_v4  ;;  %1825 = vmatmul.msk.f32.vlgmr.msra.gmra.mxu0 %vm85_vm0, %v34_v5  ;;  %v43_v23 = vld [vmem:[%s3043_s0 + $0x48] sm:$0xff]  ;;  %v44_v25 = vld [vmem:[%s3043_s0 + $0x50] sm:$0xff]  ;;  %v807_v26 = vld [vmem:[%s3042_s1 + $0x58] sm:$0xff] }
   0xa   :  { %v45_v27 = vld [vmem:[%s3043_s0 + $0x58] sm:$0xff]  ;;  %v808_v28 = vld [vmem:[%s3042_s1 + $0x60] sm:$0xff]  ;;  %v32_v30 = vld [vmem:[%s3045_s4 + $0x8] sm:$0xff] }
   0xb   :  { %v46_v29 = vld [vmem:[%s3043_s0 + $0x60] sm:$0xff]  ;;  %v809_v31 = vld [vmem:[%s3042_s1 + $0x68] sm:$0xff]  ;;  %1355 = vmatpush.msra.mxu3 %v32_v30  ;;  %601 = vmatpush.msra.mxu1 %v32_v30  ;;  %v810_v34 = vld [vmem:[%s3042_s1 + $0x70] sm:$0xff] }
   0xc   :  { %v47_v32 = vld [vmem:[%s3043_s0 + $0x68] sm:$0xff]  ;;  %v31_v33 = vld [vmem:[%s3045_s4] sm:$0xff]  ;;  %v48_v35 = vld [vmem:[%s3043_s0 + $0x70] sm:$0xff] }
   0xd   :  { %1356 = vmatpush.msra.mxu3 %v31_v33  ;;  %602 = vmatpush.msra.mxu1 %v31_v33  ;;  %v811_v36 = vld [vmem:[%s3042_s1 + $0x78] sm:$0xff]  ;;  %v2260_v38 = vld [vmem:[%s3044_s3] ss:$0 sm:$0xff]  ;;  %v813_v46 = vld [vmem:[%s3042_s1 + $0x88] sm:$0xff] }
   0xe   :  { %v49_v37 = vld [vmem:[%s3043_s0 + $0x78] sm:$0xff]  ;;  %v812_v39 = vld [vmem:[%s3042_s1 + $0x80] sm:$0xff]  ;;  %v51_v50 = vld [vmem:[%s3043_s0 + $0x88] sm:$0xff] }
   0xf   :  { %v50_v41 = vld [vmem:[%s3043_s0 + $0x80] sm:$0xff]  ;;  %v814_v54 = vld [vmem:[%s3042_s1 + $0x90] sm:$0xff]  ;;  %v815_v62 = vld [vmem:[%s3042_s1 + $0x98] sm:$0xff] }
  0x10   :  { %v52_v58 = vld [vmem:[%s3043_s0 + $0x90] sm:$0xff]  ;;  %v53_v2 = vld [vmem:[%s3043_s0 + $0x98] sm:$0xff] }
  0x11   :  { %1922 = vmatmul.msk.f32.gmra.mxu2 %vm85_vm0, %v797_v6  ;;  %1826 = vmatmul.msk.f32.gmra.mxu0 %vm85_vm0, %v35_v7  ;;  %v816_v6 = vld [vmem:[%s3042_s1 + $0xa0] sm:$0xff]  ;;  %v819_v30 = vld [vmem:[%s3042_s1 + $0xb8] sm:$0xff] }
  0x19   :  { %1923 = vmatmul.msk.f32.gmra.mxu2 %vm85_vm0, %v798_v8  ;;  %1827 = vmatmul.msk.f32.gmra.mxu0 %vm85_vm0, %v36_v9 }
  0x21   :  { %1924 = vmatmul.msk.f32.gmra.mxu2 %vm85_vm0, %v799_v10  ;;  %1828 = vmatmul.msk.f32.gmra.mxu0 %vm85_vm0, %v37_v11  ;;  %v54_v10 = vld [vmem:[%s3043_s0 + $0xa0] sm:$0xff] }
  0x29   :  { %1925 = vmatmul.msk.f32.gmra.mxu2 %vm85_vm0, %v800_v12  ;;  %1829 = vmatmul.msk.f32.gmra.mxu0 %vm85_vm0, %v38_v13 }
  0x31   :  { %1926 = vmatmul.msk.f32.gmra.mxu2 %vm85_vm0, %v801_v14  ;;  %1830 = vmatmul.msk.f32.gmra.mxu0 %vm85_vm0, %v39_v15  ;;  %v817_v14 = vld [vmem:[%s3042_s1 + $0xa8] sm:$0xff] }
  0x39   :  { %1927 = vmatmul.msk.f32.gmra.mxu2 %vm85_vm0, %v802_v16  ;;  %1831 = vmatmul.msk.f32.gmra.mxu0 %vm85_vm0, %v40_v17 }
  0x41   :  { %1928 = vmatmul.msk.f32.gmra.mxu2 %vm85_vm0, %v803_v18  ;;  %1832 = vmatmul.msk.f32.gmra.mxu0 %vm85_vm0, %v41_v19  ;;  %v55_v18 = vld [vmem:[%s3043_s0 + $0xa8] sm:$0xff] }
  0x49   :  { %1929 = vmatmul.msk.f32.gmra.mxu2 %vm85_vm0, %v804_v20  ;;  %1833 = vmatmul.msk.f32.gmra.mxu0 %vm85_vm0, %v42_v21 }
  0x51   :  { %1930 = vmatmul.msk.f32.gmra.mxu2 %vm85_vm0, %v805_v22  ;;  %1834 = vmatmul.msk.f32.gmra.mxu0 %vm85_vm0, %v43_v23  ;;  %v818_v22 = vld [vmem:[%s3042_s1 + $0xb0] sm:$0xff] }
  0x59   :  { %1931 = vmatmul.msk.f32.gmra.mxu2 %vm85_vm0, %v806_v24  ;;  %1835 = vmatmul.msk.f32.gmra.mxu0 %vm85_vm0, %v44_v25 }
  0x61   :  { %1932 = vmatmul.msk.f32.gmra.mxu2 %vm85_vm0, %v807_v26  ;;  %1836 = vmatmul.msk.f32.gmra.mxu0 %vm85_vm0, %v45_v27  ;;  %v56_v26 = vld [vmem:[%s3043_s0 + $0xb0] sm:$0xff] }
  0x69   :  { %1933 = vmatmul.msk.f32.gmra.mxu2 %vm85_vm0, %v808_v28  ;;  %1837 = vmatmul.msk.f32.gmra.mxu0 %vm85_vm0, %v46_v29 }
  0x71   :  { %1934 = vmatmul.msk.f32.gmra.mxu2 %vm85_vm0, %v809_v31  ;;  %1838 = vmatmul.msk.f32.gmra.mxu0 %vm85_vm0, %v47_v32 }
  0x79   :  { %1935 = vmatmul.msk.f32.gmra.mxu2 %vm85_vm0, %v810_v34  ;;  %1839 = vmatmul.msk.f32.gmra.mxu0 %vm85_vm0, %v48_v35  ;;  %v57_v34 = vld [vmem:[%s3043_s0 + $0xb8] sm:$0xff] }
  0x81   :  { %1936 = vmatmul.msk.f32.gmra.mxu2 %vm85_vm0, %v811_v36  ;;  %1840 = vmatmul.msk.f32.gmra.mxu0 %vm85_vm0, %v49_v37 }
  0x86   :  { %v247_v40 = vpop.f32.mrf.mxu0 }
  0x87   :  { %v248_v42 = vadd.f32 %v2260_v38, %v247_v40 }
  0x89   :  { %1937 = vmatmul.msk.f32.gmra.mxu2 %vm85_vm0, %v812_v39  ;;  %v391_v43 = vmax.f32 %v248_v42, 0.0  ;;  %1841 = vmatmul.msk.f32.gmra.mxu0 %vm85_vm0, %v50_v41  ;;  %v820_v39 = vld [vmem:[%s3042_s1 + $0xc0] sm:$0xff] }
  0x8b   :  { %1873 = vmatmul.msk.f32.vlgmr.msra.gmra.mxu1 %vm442_vm1, %v391_v43  ;;  %v58_v43 = vld [vmem:[%s3043_s0 + $0xc0] sm:$0xff] }
  0x8c   :  { %v1005_v44 = vpop.f32.mrf.mxu2 }
  0x8d   :  { %v1006_v45 = vadd.f32 %v2260_v38, %v1005_v44 }
  0x8e   :  { %v250_v47 = vpop.f32.mrf.mxu0 }
  0x8f   :  { %v1149_v48 = vmax.f32 %v1006_v45, 0.0  ;;  %v251_v49 = vadd.f32 %v2260_v38, %v250_v47  ;;  %v821_v47 = vld [vmem:[%s3042_s1 + $0xc8] sm:$0xff] }
  0x91   :  { %1938 = vmatmul.msk.f32.gmra.mxu2 %vm85_vm0, %v813_v46  ;;  %1969 = vmatmul.msk.f32.vlgmr.msra.gmra.mxu3 %vm442_vm1, %v1149_v48  ;;  %v392_v51 = vmax.f32 %v251_v49, 0.0 }
  0x92   :  { %1842 = vmatmul.msk.f32.gmra.mxu0 %vm85_vm0, %v51_v50 }
  0x93   :  { %1874 = vmatmul.msk.f32.gmra.mxu1 %vm442_vm1, %v392_v51  ;;  %v59_v51 = vld [vmem:[%s3043_s0 + $0xc8] sm:$0xff] }
  0x94   :  { %v1008_v52 = vpop.f32.mrf.mxu2 }
  0x95   :  { %v1009_v53 = vadd.f32 %v2260_v38, %v1008_v52 }
  0x96   :  { %v253_v55 = vpop.f32.mrf.mxu0 }
  0x97   :  { %v1150_v56 = vmax.f32 %v1009_v53, 0.0  ;;  %v254_v57 = vadd.f32 %v2260_v38, %v253_v55  ;;  %v822_v55 = vld [vmem:[%s3042_s1 + $0xd0] sm:$0xff] }
  0x99   :  { %1939 = vmatmul.msk.f32.gmra.mxu2 %vm85_vm0, %v814_v54  ;;  %1970 = vmatmul.msk.f32.gmra.mxu3 %vm442_vm1, %v1150_v56  ;;  %v393_v59 = vmax.f32 %v254_v57, 0.0 }
  0x9a   :  { %1843 = vmatmul.msk.f32.gmra.mxu0 %vm85_vm0, %v52_v58 }
  0x9b   :  { %1875 = vmatmul.msk.f32.gmra.mxu1 %vm442_vm1, %v393_v59  ;;  %v60_v59 = vld [vmem:[%s3043_s0 + $0xd0] sm:$0xff] }
  0x9c   :  { %v1011_v60 = vpop.f32.mrf.mxu2 }
  0x9d   :  { %v1012_v61 = vadd.f32 %v2260_v38, %v1011_v60 }
  0x9e   :  { %v256_v63 = vpop.f32.mrf.mxu0 }
  0x9f   :  { %v1151_v0 = vmax.f32 %v1012_v61, 0.0  ;;  %v257_v1 = vadd.f32 %v2260_v38, %v256_v63  ;;  %v823_v63 = vld [vmem:[%s3042_s1 + $0xd8] sm:$0xff] }
  0xa1   :  { %1940 = vmatmul.msk.f32.gmra.mxu2 %vm85_vm0, %v815_v62  ;;  %1971 = vmatmul.msk.f32.gmra.mxu3 %vm442_vm1, %v1151_v0  ;;  %v394_v3 = vmax.f32 %v257_v1, 0.0 }
  0xa2   :  { %1844 = vmatmul.msk.f32.gmra.mxu0 %vm85_vm0, %v53_v2 }
  0xa3   :  { %1876 = vmatmul.msk.f32.gmra.mxu1 %vm442_vm1, %v394_v3  ;;  %v61_v3 = vld [vmem:[%s3043_s0 + $0xd8] sm:$0xff] }
  0xa4   :  { %v1014_v4 = vpop.f32.mrf.mxu2 }
  0xa5   :  { %v1015_v5 = vadd.f32 %v2260_v38, %v1014_v4 }
  0xa6   :  { %v259_v7 = vpop.f32.mrf.mxu0 }
  0xa7   :  { %v1152_v8 = vmax.f32 %v1015_v5, 0.0  ;;  %v260_v9 = vadd.f32 %v2260_v38, %v259_v7  ;;  %v824_v7 = vld [vmem:[%s3042_s1 + $0xe0] sm:$0xff] }
  0xa9   :  { %1941 = vmatmul.msk.f32.gmra.mxu2 %vm85_vm0, %v816_v6  ;;  %1972 = vmatmul.msk.f32.gmra.mxu3 %vm442_vm1, %v1152_v8  ;;  %v395_v11 = vmax.f32 %v260_v9, 0.0 }
  0xaa   :  { %1845 = vmatmul.msk.f32.gmra.mxu0 %vm85_vm0, %v54_v10 }
  0xab   :  { %1877 = vmatmul.msk.f32.gmra.mxu1 %vm442_vm1, %v395_v11  ;;  %v62_v11 = vld [vmem:[%s3043_s0 + $0xe0] sm:$0xff] }
  0xac   :  { %v1017_v12 = vpop.f32.mrf.mxu2 }
  0xad   :  { %v1018_v13 = vadd.f32 %v2260_v38, %v1017_v12 }
  0xae   :  { %v262_v15 = vpop.f32.mrf.mxu0 }
  0xaf   :  { %v1153_v16 = vmax.f32 %v1018_v13, 0.0  ;;  %v263_v17 = vadd.f32 %v2260_v38, %v262_v15  ;;  %v825_v15 = vld [vmem:[%s3042_s1 + $0xe8] sm:$0xff] }
  0xb1   :  { %1942 = vmatmul.msk.f32.gmra.mxu2 %vm85_vm0, %v817_v14  ;;  %1973 = vmatmul.msk.f32.gmra.mxu3 %vm442_vm1, %v1153_v16  ;;  %v396_v19 = vmax.f32 %v263_v17, 0.0 }
  0xb2   :  { %1846 = vmatmul.msk.f32.gmra.mxu0 %vm85_vm0, %v55_v18 }
  0xb3   :  { %1878 = vmatmul.msk.f32.gmra.mxu1 %vm442_vm1, %v396_v19  ;;  %v63_v19 = vld [vmem:[%s3043_s0 + $0xe8] sm:$0xff] }
  0xb4   :  { %v1020_v20 = vpop.f32.mrf.mxu2 }
  0xb5   :  { %v1021_v21 = vadd.f32 %v2260_v38, %v1020_v20 }
  0xb6   :  { %v265_v23 = vpop.f32.mrf.mxu0 }
  0xb7   :  { %v1154_v24 = vmax.f32 %v1021_v21, 0.0  ;;  %v266_v25 = vadd.f32 %v2260_v38, %v265_v23  ;;  %v826_v23 = vld [vmem:[%s3042_s1 + $0xf0] sm:$0xff] }
  0xb9   :  { %1943 = vmatmul.msk.f32.gmra.mxu2 %vm85_vm0, %v818_v22  ;;  %1974 = vmatmul.msk.f32.gmra.mxu3 %vm442_vm1, %v1154_v24  ;;  %v397_v27 = vmax.f32 %v266_v25, 0.0 }
  0xba   :  { %1847 = vmatmul.msk.f32.gmra.mxu0 %vm85_vm0, %v56_v26 }
  0xbb   :  { %1879 = vmatmul.msk.f32.gmra.mxu1 %vm442_vm1, %v397_v27  ;;  %v64_v27 = vld [vmem:[%s3043_s0 + $0xf0] sm:$0xff] }
  0xbc   :  { %v1023_v28 = vpop.f32.mrf.mxu2 }
  0xbd   :  { %v1024_v29 = vadd.f32 %v2260_v38, %v1023_v28 }
  0xbe   :  { %v268_v31 = vpop.f32.mrf.mxu0 }
  0xbf   :  { %v1155_v32 = vmax.f32 %v1024_v29, 0.0  ;;  %v269_v33 = vadd.f32 %v2260_v38, %v268_v31  ;;  %v827_v31 = vld [vmem:[%s3042_s1 + $0xf8] sm:$0xff] }
  0xc1   :  { %1944 = vmatmul.msk.f32.gmra.mxu2 %vm85_vm0, %v819_v30  ;;  %1975 = vmatmul.msk.f32.gmra.mxu3 %vm442_vm1, %v1155_v32  ;;  %v398_v35 = vmax.f32 %v269_v33, 0.0 }
  0xc2   :  { %1848 = vmatmul.msk.f32.gmra.mxu0 %vm85_vm0, %v57_v34 }
  0xc3   :  { %1880 = vmatmul.msk.f32.gmra.mxu1 %vm442_vm1, %v398_v35  ;;  %v65_v35 = vld [vmem:[%s3043_s0 + $0xf8] sm:$0xff] }
  0xc4   :  { %v1026_v36 = vpop.f32.mrf.mxu2 }
  0xc5   :  { %v1027_v37 = vadd.f32 %v2260_v38, %v1026_v36 }
  0xc6   :  { %v271_v40 = vpop.f32.mrf.mxu0 }
  0xc7   :  { %v1156_v41 = vmax.f32 %v1027_v37, 0.0  ;;  %v272_v42 = vadd.f32 %v2260_v38, %v271_v40  ;;  %v828_v40 = vld [vmem:[%s3042_s1 + $0x100] sm:$0xff] }
  0xc9   :  { %1945 = vmatmul.msk.f32.gmra.mxu2 %vm85_vm0, %v820_v39  ;;  %1976 = vmatmul.msk.f32.gmra.mxu3 %vm442_vm1, %v1156_v41  ;;  %v399_v44 = vmax.f32 %v272_v42, 0.0 }
  0xca   :  { %1849 = vmatmul.msk.f32.gmra.mxu0 %vm85_vm0, %v58_v43 }
  0xcb   :  { %1881 = vmatmul.msk.f32.gmra.mxu1 %vm442_vm1, %v399_v44  ;;  %v66_v44 = vld [vmem:[%s3043_s0 + $0x100] sm:$0xff] }
  0xcc   :  { %v1029_v45 = vpop.f32.mrf.mxu2 }
  0xcd   :  { %v1030_v46 = vadd.f32 %v2260_v38, %v1029_v45 }
  0xce   :  { %v274_v48 = vpop.f32.mrf.mxu0 }
  0xcf   :  { %v1157_v49 = vmax.f32 %v1030_v46, 0.0  ;;  %v275_v50 = vadd.f32 %v2260_v38, %v274_v48 }
  0xd1   :  { %1946 = vmatmul.msk.f32.gmra.mxu2 %vm85_vm0, %v821_v47  ;;  %1977 = vmatmul.msk.f32.gmra.mxu3 %vm442_vm1, %v1157_v49  ;;  %v400_v52 = vmax.f32 %v275_v50, 0.0  ;;  %v829_v49 = vld [vmem:[%s3042_s1 + $0x108] sm:$0xff] }
  0xd2   :  { %1850 = vmatmul.msk.f32.gmra.mxu0 %vm85_vm0, %v59_v51 }
  0xd3   :  { %1882 = vmatmul.msk.f32.gmra.mxu1 %vm442_vm1, %v400_v52  ;;  %v67_v52 = vld [vmem:[%s3043_s0 + $0x108] sm:$0xff] }
  0xd4   :  { %v1032_v53 = vpop.f32.mrf.mxu2 }
  0xd5   :  { %v1033_v54 = vadd.f32 %v2260_v38, %v1032_v53 }
  0xd6   :  { %v277_v56 = vpop.f32.mrf.mxu0 }
  0xd7   :  { %v1158_v57 = vmax.f32 %v1033_v54, 0.0  ;;  %v278_v58 = vadd.f32 %v2260_v38, %v277_v56 }
  0xd9   :  { %1947 = vmatmul.msk.f32.gmra.mxu2 %vm85_vm0, %v822_v55  ;;  %1978 = vmatmul.msk.f32.gmra.mxu3 %vm442_vm1, %v1158_v57  ;;  %v401_v60 = vmax.f32 %v278_v58, 0.0 }
  0xda   :  { %1851 = vmatmul.msk.f32.gmra.mxu0 %vm85_vm0, %v60_v59  ;;  %v830_v59 = vld [vmem:[%s3042_s1 + $0x110] sm:$0xff] }
  0xdb   :  { %1883 = vmatmul.msk.f32.gmra.mxu1 %vm442_vm1, %v401_v60 }
  0xdc   :  { %v1035_v61 = vpop.f32.mrf.mxu2 }
  0xdd   :  { %v1036_v62 = vadd.f32 %v2260_v38, %v1035_v61 }
  0xde   :  { %v280_v0 = vpop.f32.mrf.mxu0 }
  0xdf   :  { %v1159_v1 = vmax.f32 %v1036_v62, 0.0  ;;  %v281_v2 = vadd.f32 %v2260_v38, %v280_v0  ;;  %v68_v62 = vld [vmem:[%s3043_s0 + $0x110] sm:$0xff] }
  0xe1   :  { %1948 = vmatmul.msk.f32.gmra.mxu2 %vm85_vm0, %v823_v63  ;;  %1979 = vmatmul.msk.f32.gmra.mxu3 %vm442_vm1, %v1159_v1  ;;  %v402_v4 = vmax.f32 %v281_v2, 0.0 }
  0xe2   :  { %1852 = vmatmul.msk.f32.gmra.mxu0 %vm85_vm0, %v61_v3 }
  0xe3   :  { %1884 = vmatmul.msk.f32.gmra.mxu1 %vm442_vm1, %v402_v4 }
  0xe4   :  { %v1038_v5 = vpop.f32.mrf.mxu2 }
  0xe5   :  { %v1039_v6 = vadd.f32 %v2260_v38, %v1038_v5  ;;  %v831_v5 = vld [vmem:[%s3042_s1 + $0x118] sm:$0xff] }
  0xe6   :  { %v283_v8 = vpop.f32.mrf.mxu0 }
  0xe7   :  { %v1160_v9 = vmax.f32 %v1039_v6, 0.0  ;;  %v284_v10 = vadd.f32 %v2260_v38, %v283_v8  ;;  %v69_v8 = vld [vmem:[%s3043_s0 + $0x118] sm:$0xff] }
  0xe9   :  { %1949 = vmatmul.msk.f32.gmra.mxu2 %vm85_vm0, %v824_v7  ;;  %1980 = vmatmul.msk.f32.gmra.mxu3 %vm442_vm1, %v1160_v9  ;;  %v403_v12 = vmax.f32 %v284_v10, 0.0 }
  0xea   :  { %1853 = vmatmul.msk.f32.gmra.mxu0 %vm85_vm0, %v62_v11 }
  0xeb   :  { %1885 = vmatmul.msk.f32.gmra.mxu1 %vm442_vm1, %v403_v12 }
  0xec   :  { %v1041_v13 = vpop.f32.mrf.mxu2 }
  0xed   :  { %v1042_v14 = vadd.f32 %v2260_v38, %v1041_v13 }
  0xee   :  { %v286_v16 = vpop.f32.mrf.mxu0 }
  0xef   :  { %v1161_v17 = vmax.f32 %v1042_v14, 0.0  ;;  %v287_v18 = vadd.f32 %v2260_v38, %v286_v16 }
  0xf1   :  { %1950 = vmatmul.msk.f32.gmra.mxu2 %vm85_vm0, %v825_v15  ;;  %1981 = vmatmul.msk.f32.gmra.mxu3 %vm442_vm1, %v1161_v17  ;;  %v404_v20 = vmax.f32 %v287_v18, 0.0  ;;  %v832_v15 = vld [vmem:[%s3042_s1 + $0x120] sm:$0xff] }
  0xf2   :  { %1854 = vmatmul.msk.f32.gmra.mxu0 %vm85_vm0, %v63_v19  ;;  %v70_v18 = vld [vmem:[%s3043_s0 + $0x120] sm:$0xff] }
  0xf3   :  { %1886 = vmatmul.msk.f32.gmra.mxu1 %vm442_vm1, %v404_v20 }
  0xf4   :  { %v1044_v21 = vpop.f32.mrf.mxu2 }
  0xf5   :  { %v1045_v22 = vadd.f32 %v2260_v38, %v1044_v21 }
  0xf6   :  { %v289_v24 = vpop.f32.mrf.mxu0 }
  0xf7   :  { %v1162_v25 = vmax.f32 %v1045_v22, 0.0  ;;  %v290_v26 = vadd.f32 %v2260_v38, %v289_v24 }
  0xf9   :  { %1951 = vmatmul.msk.f32.gmra.mxu2 %vm85_vm0, %v826_v23  ;;  %1982 = vmatmul.msk.f32.gmra.mxu3 %vm442_vm1, %v1162_v25  ;;  %v405_v28 = vmax.f32 %v290_v26, 0.0  ;;  %v833_v25 = vld [vmem:[%s3042_s1 + $0x128] sm:$0xff] }
  0xfa   :  { %1855 = vmatmul.msk.f32.gmra.mxu0 %vm85_vm0, %v64_v27 }
  0xfb   :  { %1887 = vmatmul.msk.f32.gmra.mxu1 %vm442_vm1, %v405_v28  ;;  %v71_v28 = vld [vmem:[%s3043_s0 + $0x128] sm:$0xff] }
  0xfc   :  { %v1047_v29 = vpop.f32.mrf.mxu2 }
  0xfd   :  { %v1048_v30 = vadd.f32 %v2260_v38, %v1047_v29 }
  0xfe   :  { %v292_v32 = vpop.f32.mrf.mxu0 }
  0xff   :  { %v1163_v33 = vmax.f32 %v1048_v30, 0.0  ;;  %v293_v34 = vadd.f32 %v2260_v38, %v292_v32 }
 0x101   :  { %1952 = vmatmul.msk.f32.gmra.mxu2 %vm85_vm0, %v827_v31  ;;  %1983 = vmatmul.msk.f32.gmra.mxu3 %vm442_vm1, %v1163_v33  ;;  %v406_v36 = vmax.f32 %v293_v34, 0.0 }
 0x102   :  { %1856 = vmatmul.msk.f32.gmra.mxu0 %vm85_vm0, %v65_v35  ;;  %v834_v35 = vld [vmem:[%s3042_s1 + $0x130] sm:$0xff] }
 0x103   :  { %1888 = vmatmul.msk.f32.gmra.mxu1 %vm442_vm1, %v406_v36 }
 0x104   :  { %v1050_v37 = vpop.f32.mrf.mxu2 }
 0x105   :  { %v1051_v39 = vadd.f32 %v2260_v38, %v1050_v37 }
 0x106   :  { %v295_v41 = vpop.f32.mrf.mxu0 }
 0x107   :  { %v1164_v42 = vmax.f32 %v1051_v39, 0.0  ;;  %v296_v43 = vadd.f32 %v2260_v38, %v295_v41  ;;  %v72_v39 = vld [vmem:[%s3043_s0 + $0x130] sm:$0xff] }
 0x108   :  { %v2460_v45 = vpop.f32.mrf.mxu1 }
 0x109   :  { %1953 = vmatmul.msk.f32.gmra.mxu2 %vm85_vm0, %v828_v40  ;;  %1984 = vmatmul.msk.f32.gmra.mxu3 %vm442_vm1, %v1164_v42  ;;  %v407_v46 = vmax.f32 %v296_v43, 0.0 }
 0x10a   :  { %1857 = vmatmul.msk.f32.gmra.mxu0 %vm85_vm0, %v66_v44 }
 0x10b   :  { %1889 = vmatmul.msk.f32.gmra.mxu1 %vm442_vm1, %v407_v46 }
 0x10c   :  { %v1053_v47 = vpop.f32.mrf.mxu2 }
 0x10d   :  { %v1054_v48 = vadd.f32 %v2260_v38, %v1053_v47  ;;  %v835_v47 = vld [vmem:[%s3042_s1 + $0x138] sm:$0xff] }
 0x10f   :  { %v1165_v50 = vmax.f32 %v1054_v48, 0.0  ;;  %v298_v51 = vpop.f32.mrf.mxu0 }
 0x110   :  { %v299_v53 = vadd.f32 %v2260_v38, %v298_v51  ;;  %v2474_v54 = vpop.f32.mrf.mxu1 }
 0x111   :  { %1954 = vmatmul.msk.f32.gmra.mxu2 %vm85_vm0, %v829_v49  ;;  %1985 = vmatmul.msk.f32.gmra.mxu3 %vm442_vm1, %v1165_v50  ;;  %v73_v50 = vld [vmem:[%s3043_s0 + $0x138] sm:$0xff] }
 0x112   :  { %v408_v55 = vmax.f32 %v299_v53, 0.0  ;;  %1858 = vmatmul.msk.f32.gmra.mxu0 %vm85_vm0, %v67_v52 }
 0x114   :  { %v1056_v56 = vpop.f32.mrf.mxu2  ;;  %v2479_v57 = vpop.f32.mrf.mxu3  ;;  %1890 = vmatmul.msk.f32.gmra.mxu1 %vm442_vm1, %v408_v55 }
 0x115   :  { %v1057_v58 = vadd.f32 %v2260_v38, %v1056_v56 }
 0x117   :  { %v1166_v60 = vmax.f32 %v1057_v58, 0.0  ;;  %v301_v61 = vpop.f32.mrf.mxu0 }
 0x118   :  { %v302_v63 = vadd.f32 %v2260_v38, %v301_v61  ;;  %v2490_v0 = vpop.f32.mrf.mxu1 }
 0x119   :  { %1955 = vmatmul.msk.f32.gmra.mxu2 %vm85_vm0, %v830_v59  ;;  %1986 = vmatmul.msk.f32.gmra.mxu3 %vm442_vm1, %v1166_v60  ;;  %v836_v59 = vld [vmem:[%s3042_s1 + $0x140] sm:$0xff] }
 0x11a   :  { %v409_v1 = vmax.f32 %v302_v63, 0.0  ;;  %1859 = vmatmul.msk.f32.gmra.mxu0 %vm85_vm0, %v68_v62  ;;  %v74_v62 = vld [vmem:[%s3043_s0 + $0x140] sm:$0xff] }
 0x11c   :  { %v1059_v2 = vpop.f32.mrf.mxu2  ;;  %v2495_v3 = vpop.f32.mrf.mxu3  ;;  %1891 = vmatmul.msk.f32.gmra.mxu1 %vm442_vm1, %v409_v1 }
 0x11d   :  { %v1060_v4 = vadd.f32 %v2260_v38, %v1059_v2 }
 0x11f   :  { %v1167_v6 = vmax.f32 %v1060_v4, 0.0  ;;  %v304_v7 = vpop.f32.mrf.mxu0 }
 0x120   :  { %v305_v9 = vadd.f32 %v2260_v38, %v304_v7  ;;  %v2506_v10 = vpop.f32.mrf.mxu1  ;;  %v837_v7 = vld [vmem:[%s3042_s1 + $0x148] sm:$0xff] }
 0x121   :  { %1956 = vmatmul.msk.f32.gmra.mxu2 %vm85_vm0, %v831_v5  ;;  %1987 = vmatmul.msk.f32.gmra.mxu3 %vm442_vm1, %v1167_v6 }
 0x122   :  { %v410_v11 = vmax.f32 %v305_v9, 0.0  ;;  %1860 = vmatmul.msk.f32.gmra.mxu0 %vm85_vm0, %v69_v8 }
 0x124   :  { %v1062_v12 = vpop.f32.mrf.mxu2  ;;  %v2511_v13 = vpop.f32.mrf.mxu3  ;;  %1892 = vmatmul.msk.f32.gmra.mxu1 %vm442_vm1, %v410_v11  ;;  %v75_v11 = vld [vmem:[%s3043_s0 + $0x148] sm:$0xff] }
 0x125   :  { %v1063_v14 = vadd.f32 %v2260_v38, %v1062_v12 }
 0x127   :  { %v1168_v16 = vmax.f32 %v1063_v14, 0.0  ;;  %v307_v17 = vpop.f32.mrf.mxu0 }
 0x128   :  { %v308_v19 = vadd.f32 %v2260_v38, %v307_v17  ;;  %v2522_v20 = vpop.f32.mrf.mxu1 }
 0x129   :  { %1957 = vmatmul.msk.f32.gmra.mxu2 %vm85_vm0, %v832_v15  ;;  %1988 = vmatmul.msk.f32.gmra.mxu3 %vm442_vm1, %v1168_v16 }
 0x12a   :  { %v411_v21 = vmax.f32 %v308_v19, 0.0  ;;  %1861 = vmatmul.msk.f32.gmra.mxu0 %vm85_vm0, %v70_v18  ;;  %v838_v19 = vld [vmem:[%s3042_s1 + $0x150] sm:$0xff] }
 0x12c   :  { %v1065_v22 = vpop.f32.mrf.mxu2  ;;  %v2527_v23 = vpop.f32.mrf.mxu3  ;;  %1893 = vmatmul.msk.f32.gmra.mxu1 %vm442_vm1, %v411_v21 }
 0x12d   :  { %v1066_v24 = vadd.f32 %v2260_v38, %v1065_v22 }
 0x12f   :  { %v1169_v26 = vmax.f32 %v1066_v24, 0.0  ;;  %v310_v27 = vpop.f32.mrf.mxu0  ;;  %v76_v24 = vld [vmem:[%s3043_s0 + $0x150] sm:$0xff] }
 0x130   :  { %v311_v29 = vadd.f32 %v2260_v38, %v310_v27  ;;  %v2538_v30 = vpop.f32.mrf.mxu1 }
 0x131   :  { %1958 = vmatmul.msk.f32.gmra.mxu2 %vm85_vm0, %v833_v25  ;;  %1989 = vmatmul.msk.f32.gmra.mxu3 %vm442_vm1, %v1169_v26 }
 0x132   :  { %v412_v31 = vmax.f32 %v311_v29, 0.0  ;;  %1862 = vmatmul.msk.f32.gmra.mxu0 %vm85_vm0, %v71_v28 }
 0x134   :  { %v1068_v32 = vpop.f32.mrf.mxu2  ;;  %v2543_v33 = vpop.f32.mrf.mxu3  ;;  %1894 = vmatmul.msk.f32.gmra.mxu1 %vm442_vm1, %v412_v31 }
 0x135   :  { %v1069_v34 = vadd.f32 %v2260_v38, %v1068_v32  ;;  %v839_v32 = vld [vmem:[%s3042_s1 + $0x158] sm:$0xff] }
 0x137   :  { %v1170_v36 = vmax.f32 %v1069_v34, 0.0  ;;  %v313_v37 = vpop.f32.mrf.mxu0 }
 0x138   :  { %v314_v40 = vadd.f32 %v2260_v38, %v313_v37  ;;  %v2554_v41 = vpop.f32.mrf.mxu1 }
 0x139   :  { %1959 = vmatmul.msk.f32.gmra.mxu2 %vm85_vm0, %v834_v35  ;;  %1990 = vmatmul.msk.f32.gmra.mxu3 %vm442_vm1, %v1170_v36  ;;  %v77_v36 = vld [vmem:[%s3043_s0 + $0x158] sm:$0xff] }
 0x13a   :  { %v413_v42 = vmax.f32 %v314_v40, 0.0  ;;  %1863 = vmatmul.msk.f32.gmra.mxu0 %vm85_vm0, %v72_v39 }
 0x13c   :  { %v1071_v43 = vpop.f32.mrf.mxu2  ;;  %v2559_v44 = vpop.f32.mrf.mxu3  ;;  %1895 = vmatmul.msk.f32.gmra.mxu1 %vm442_vm1, %v413_v42 }
 0x13d   :  { %v1072_v46 = vadd.f32 %v2260_v38, %v1071_v43 }
 0x13f   :  { %v1171_v48 = vmax.f32 %v1072_v46, 0.0  ;;  %v316_v49 = vpop.f32.mrf.mxu0 }
 0x140   :  { %v317_v51 = vadd.f32 %v2260_v38, %v316_v49  ;;  %v2570_v52 = vpop.f32.mrf.mxu1 }
 0x141   :  { %1960 = vmatmul.msk.f32.gmra.mxu2 %vm85_vm0, %v835_v47  ;;  %1991 = vmatmul.msk.f32.gmra.mxu3 %vm442_vm1, %v1171_v48  ;;  %v840_v47 = vld [vmem:[%s3042_s1 + $0x160] sm:$0xff] }
 0x142   :  { %v414_v53 = vmax.f32 %v317_v51, 0.0  ;;  %1864 = vmatmul.msk.f32.gmra.mxu0 %vm85_vm0, %v73_v50  ;;  %v78_v50 = vld [vmem:[%s3043_s0 + $0x160] sm:$0xff] }
 0x144   :  { %v1074_v55 = vpop.f32.mrf.mxu2  ;;  %v2575_v56 = vpop.f32.mrf.mxu3  ;;  %1896 = vmatmul.msk.f32.gmra.mxu1 %vm442_vm1, %v414_v53 }
 0x145   :  { %v1075_v58 = vadd.f32 %v2260_v38, %v1074_v55 }
 0x147   :  { %v1172_v60 = vmax.f32 %v1075_v58, 0.0  ;;  %v319_v61 = vpop.f32.mrf.mxu0 }
 0x148   :  { %v320_v63 = vadd.f32 %v2260_v38, %v319_v61  ;;  %v2586_v1 = vpop.f32.mrf.mxu1  ;;  %v841_v61 = vld [vmem:[%s3042_s1 + $0x168] sm:$0xff] }
 0x149   :  { %1961 = vmatmul.msk.f32.gmra.mxu2 %vm85_vm0, %v836_v59  ;;  %1992 = vmatmul.msk.f32.gmra.mxu3 %vm442_vm1, %v1172_v60 }
 0x14a   :  { %v415_v2 = vmax.f32 %v320_v63, 0.0  ;;  %1865 = vmatmul.msk.f32.gmra.mxu0 %vm85_vm0, %v74_v62 }
 0x14c   :  { %v1077_v4 = vpop.f32.mrf.mxu2  ;;  %v2591_v5 = vpop.f32.mrf.mxu3  ;;  %1897 = vmatmul.msk.f32.gmra.mxu1 %vm442_vm1, %v415_v2  ;;  %v79_v2 = vld [vmem:[%s3043_s0 + $0x168] sm:$0xff] }
 0x14d   :  { %v1078_v6 = vadd.f32 %v2260_v38, %v1077_v4 }
 0x14f   :  { %v1173_v8 = vmax.f32 %v1078_v6, 0.0  ;;  %v322_v9 = vpop.f32.mrf.mxu0 }
 0x150   :  { %v323_v12 = vadd.f32 %v2260_v38, %v322_v9  ;;  %v2602_v14 = vpop.f32.mrf.mxu1 }
 0x151   :  { %1962 = vmatmul.msk.f32.gmra.mxu2 %vm85_vm0, %v837_v7  ;;  %1993 = vmatmul.msk.f32.gmra.mxu3 %vm442_vm1, %v1173_v8 }
 0x152   :  { %v416_v15 = vmax.f32 %v323_v12, 0.0  ;;  %1866 = vmatmul.msk.f32.gmra.mxu0 %vm85_vm0, %v75_v11  ;;  %v842_v12 = vld [vmem:[%s3042_s1 + $0x170] sm:$0xff] }
 0x154   :  { %v1080_v16 = vpop.f32.mrf.mxu2  ;;  %v2607_v17 = vpop.f32.mrf.mxu3  ;;  %1898 = vmatmul.msk.f32.gmra.mxu1 %vm442_vm1, %v416_v15 }
 0x155   :  { %v1081_v18 = vadd.f32 %v2260_v38, %v1080_v16 }
 0x157   :  { %v1174_v21 = vmax.f32 %v1081_v18, 0.0  ;;  %v325_v22 = vpop.f32.mrf.mxu0  ;;  %v80_v18 = vld [vmem:[%s3043_s0 + $0x170] sm:$0xff] }
 0x158   :  { %v326_v25 = vadd.f32 %v2260_v38, %v325_v22  ;;  %v2618_v26 = vpop.f32.mrf.mxu1 }
 0x159   :  { %1963 = vmatmul.msk.f32.gmra.mxu2 %vm85_vm0, %v838_v19  ;;  %1994 = vmatmul.msk.f32.gmra.mxu3 %vm442_vm1, %v1174_v21 }
 0x15a   :  { %v417_v27 = vmax.f32 %v326_v25, 0.0  ;;  %1867 = vmatmul.msk.f32.gmra.mxu0 %vm85_vm0, %v76_v24 }
 0x15c   :  { %v1083_v28 = vpop.f32.mrf.mxu2  ;;  %v2623_v29 = vpop.f32.mrf.mxu3  ;;  %1899 = vmatmul.msk.f32.gmra.mxu1 %vm442_vm1, %v417_v27 }
 0x15d   :  { %v1084_v31 = vadd.f32 %v2260_v38, %v1083_v28  ;;  %v843_v28 = vld [vmem:[%s3042_s1 + $0x178] sm:$0xff] }
 0x15f   :  { %v1175_v34 = vmax.f32 %v1084_v31, 0.0  ;;  %v328_v35 = vpop.f32.mrf.mxu0 }
 0x160   :  { %v329_v37 = vadd.f32 %v2260_v38, %v328_v35  ;;  %v2634_v39 = vpop.f32.mrf.mxu1 }
 0x161   :  { %1964 = vmatmul.msk.f32.gmra.mxu2 %vm85_vm0, %v839_v32  ;;  %1995 = vmatmul.msk.f32.gmra.mxu3 %vm442_vm1, %v1175_v34  ;;  %v81_v34 = vld [vmem:[%s3043_s0 + $0x178] sm:$0xff] }
 0x162   :  { %v418_v40 = vmax.f32 %v329_v37, 0.0  ;;  %1868 = vmatmul.msk.f32.gmra.mxu0 %vm85_vm0, %v77_v36 }
 0x164   :  { %v1086_v42 = vpop.f32.mrf.mxu2  ;;  %v2639_v43 = vpop.f32.mrf.mxu3  ;;  %1900 = vmatmul.msk.f32.gmra.mxu1 %vm442_vm1, %v418_v40 }
 0x165   :  { %v1087_v46 = vadd.f32 %v2260_v38, %v1086_v42 }
 0x167   :  { %v1176_v48 = vmax.f32 %v1087_v46, 0.0  ;;  %v331_v49 = vpop.f32.mrf.mxu0 }
 0x168   :  { %v332_v51 = vadd.f32 %v2260_v38, %v331_v49  ;;  %v2650_v53 = vpop.f32.mrf.mxu1 }
 0x169   :  { %1965 = vmatmul.msk.f32.gmra.mxu2 %vm85_vm0, %v840_v47  ;;  %1996 = vmatmul.msk.f32.gmra.mxu3 %vm442_vm1, %v1176_v48  ;;  %v2700_v47 = vld [vmem:[%s3046_s5] ss:$0 sm:$0xff] }
 0x16a   :  { %v419_v55 = vmax.f32 %v332_v51, 0.0  ;;  %1869 = vmatmul.msk.f32.gmra.mxu0 %vm85_vm0, %v78_v50 }
 0x16c   :  { %v1089_v58 = vpop.f32.mrf.mxu2  ;;  %v2655_v59 = vpop.f32.mrf.mxu3  ;;  %1901 = vmatmul.msk.f32.gmra.mxu1 %vm442_vm1, %v419_v55 }
 0x16d   :  { %v1090_v60 = vadd.f32 %v2260_v38, %v1089_v58 }
 0x16f   :  { %v1177_v62 = vmax.f32 %v1090_v60, 0.0  ;;  %v334_v63 = vpop.f32.mrf.mxu0 }
 0x170   :  { %v335_v4 = vadd.f32 %v2260_v38, %v334_v63  ;;  %v643_v6 = vpop.f32.mrf.mxu1 }
 0x171   :  { %1966 = vmatmul.msk.f32.gmra.mxu2 %vm85_vm0, %v841_v61  ;;  %1997 = vmatmul.msk.f32.gmra.mxu3 %vm442_vm1, %v1177_v62 }
 0x172   :  { %v420_v7 = vmax.f32 %v335_v4, 0.0  ;;  %1870 = vmatmul.msk.f32.gmra.mxu0 %vm85_vm0, %v79_v2 }
 0x174   :  { %v1092_v8 = vpop.f32.mrf.mxu2  ;;  %v2669_v9 = vpop.f32.mrf.mxu3  ;;  %1902 = vmatmul.msk.f32.gmra.mxu1 %vm442_vm1, %v420_v7 }
 0x175   :  { %v1093_v11 = vadd.f32 %v2260_v38, %v1092_v8 }
 0x177   :  { %v1178_v15 = vmax.f32 %v1093_v11, 0.0  ;;  %v337_v16 = vpop.f32.mrf.mxu0 }
 0x178   :  { %v338_v19 = vadd.f32 %v2260_v38, %v337_v16  ;;  %v646_v21 = vpop.f32.mrf.mxu1 }
 0x179   :  { %1967 = vmatmul.msk.f32.gmra.mxu2 %vm85_vm0, %v842_v12  ;;  %1998 = vmatmul.msk.f32.gmra.mxu3 %vm442_vm1, %v1178_v15  ;;  %v647_v60 = vadd.f32 %v2700_v47, %v646_v21  ;;  %v644_v15 = vadd.f32 %v2700_v47, %v643_v6 }
 0x17a   :  { %v421_v22 = vmax.f32 %v338_v19, 0.0  ;;  %1871 = vmatmul.msk.f32.gmra.mxu0 %vm85_vm0, %v80_v18 }
 0x17b   :  { %v762_v19 = vmax.f32 %v647_v60, 0.0 }
 0x17c   :  { %v1095_v24 = vpop.f32.mrf.mxu2  ;;  %v1397_v25 = vpop.f32.mrf.mxu3  ;;  %1903 = vmatmul.msk.f32.gmra.mxu1 %vm442_vm1, %v421_v22 }
 0x17d   :  { %v1096_v27 = vadd.f32 %v2260_v38, %v1095_v24  ;;  %v1398_v18 = vadd.f32 %v2700_v47, %v1397_v25  ;;  %v1395_v25 = vadd.f32 %v2700_v47, %v2669_v9 }
 0x17f   :  { %v1179_v31 = vmax.f32 %v1096_v27, 0.0  ;;  %v340_v32 = vpop.f32.mrf.mxu0 }
 0x180   :  { %v341_v35 = vadd.f32 %v2260_v38, %v340_v32  ;;  %v649_v36 = vpop.f32.mrf.mxu1 }
 0x181   :  { %1968 = vmatmul.msk.f32.gmra.mxu2 %vm85_vm0, %v843_v28  ;;  %1999 = vmatmul.msk.f32.gmra.mxu3 %vm442_vm1, %v1179_v31  ;;  %v650_v55 = vadd.f32 %v2700_v47, %v649_v36  ;;  %v641_v28 = vadd.f32 %v2700_v47, %v2650_v53  ;;  %v761_v31 = vmax.f32 %v644_v15, 0.0  ;;  %v638_v53 = vadd.f32 %v2700_v47, %v2634_v39 }
 0x182   :  { %v422_v37 = vmax.f32 %v341_v35, 0.0  ;;  %1872 = vmatmul.msk.f32.gmra.mxu0 %vm85_vm0, %v81_v34  ;;  %v1515_v34 = vmax.f32 %v1398_v18, 0.0 }
 0x183   :  { %v763_v2 = vmax.f32 %v650_v55, 0.0  ;;  %v759_v60 = vmax.f32 %v638_v53, 0.0 }
 0x184   :  { %v1098_v40 = vpop.f32.mrf.mxu2  ;;  %v1400_v42 = vpop.f32.mrf.mxu3  ;;  %1904 = vmatmul.msk.f32.gmra.mxu1 %vm442_vm1, %v422_v37  ;;  %v1563_v9 = vsub.f32 %v761_v31, %v1515_v34 }
 0x185   :  { %v1099_v46 = vadd.f32 %v2260_v38, %v1098_v40  ;;  %v1401_v63 = vadd.f32 %v2700_v47, %v1400_v42 }
 0x187   :  { %v1180_v48 = vmax.f32 %v1099_v46, 0.0  ;;  %v343_v49 = vpop.f32.mrf.mxu0  ;;  %v1516_v21 = vmax.f32 %v1401_v63, 0.0  ;;  %v1392_v46 = vadd.f32 %v2700_v47, %v2655_v59  ;;  %v1389_v59 = vadd.f32 %v2700_v47, %v2639_v43 }
 0x188   :  { %v344_v50 = vadd.f32 %v2260_v38, %v343_v49  ;;  %v2703_v51 = vpop.f32.mrf.mxu1  ;;  %v1514_v49 = vmax.f32 %v1395_v25, 0.0 }
 0x189   :  { %2000 = vmatmul.msk.f32.gmra.mxu3 %vm442_vm1, %v1180_v48  ;;  %v1564_v36 = vsub.f32 %v762_v19, %v1516_v21  ;;  %v760_v48 = vmax.f32 %v641_v28, 0.0  ;;  %v1512_v15 = vmax.f32 %v1389_v59, 0.0  ;;  %v629_v19 = vadd.f32 %v2700_v47, %v2586_v1 }
 0x18a   :  { %v423_v58 = vmax.f32 %v344_v50, 0.0  ;;  %v626_v1 = vadd.f32 %v2700_v47, %v2570_v52 }
 0x18c   :  { %v1101_v61 = vpop.f32.mrf.mxu2  ;;  %v1403_v62 = vpop.f32.mrf.mxu3  ;;  %1905 = vmatmul.msk.f32.gmra.mxu1 %vm442_vm1, %v423_v58  ;;  %v635_v58 = vadd.f32 %v2700_v47, %v2618_v26  ;;  %v632_v26 = vadd.f32 %v2700_v47, %v2602_v14 }
 0x18d   :  { %v1102_v4 = vadd.f32 %v2260_v38, %v1101_v61  ;;  %v1404_v7 = vadd.f32 %v2700_v47, %v1403_v62  ;;  %v1513_v62 = vmax.f32 %v1392_v46, 0.0  ;;  %v755_v46 = vmax.f32 %v626_v1, 0.0 }
 0x18e   :  { %v757_v21 = vmax.f32 %v632_v26, 0.0 }
 0x18f   :  { %v1181_v8 = vmax.f32 %v1102_v4, 0.0  ;;  %v1517_v11 = vmax.f32 %v1404_v7, 0.0  ;;  %v346_v12 = vpop.f32.mrf.mxu0  ;;  %v1561_v43 = vsub.f32 %v759_v60, %v1513_v62  ;;  %v620_v60 = vadd.f32 %v2700_v47, %v2538_v30 }
 0x190   :  { %v347_v16 = vadd.f32 %v2260_v38, %v346_v12  ;;  %v758_v12 = vmax.f32 %v635_v58, 0.0 }
 0x191   :  { %2001 = vmatmul.msk.f32.gmra.mxu3 %vm442_vm1, %v1181_v8  ;;  %v1565_v22 = vsub.f32 %v763_v2, %v1517_v11  ;;  %v2716_v24 = vpop.f32.mrf.mxu1  ;;  %v1562_v2 = vsub.f32 %v760_v48, %v1514_v49  ;;  %v1386_v11 = vadd.f32 %v2700_v47, %v2623_v29  ;;  %v1383_v29 = vadd.f32 %v2700_v47, %v2607_v17  ;;  %v2783_v49 = vld [vmem:[%s3044_s3] ss:$0 sm:$0xff] }
 0x192   :  { %v424_v27 = vmax.f32 %v347_v16, 0.0  ;;  %v1560_v31 = vsub.f32 %v758_v12, %v1512_v15  ;;  %v753_v26 = vmax.f32 %v620_v60, 0.0 }
 0x193   :  { %2017 = vmatpush.xpose.msk.msrb.mxu1 %vm442_vm1, %v1565_v22 }
 0x194   :  { %v1104_v32 = vpop.f32.mrf.mxu2  ;;  %v2721_v6 = vpop.f32.mrf.mxu3  ;;  %1906 = vmatmul.msk.f32.gmra.mxu1 %vm442_vm1, %v424_v27  ;;  %v1511_v27 = vmax.f32 %v1386_v11, 0.0 }
 0x195   :  { %v1105_v35 = vadd.f32 %v2260_v38, %v1104_v32 }
 0x196   :  { %v1559_v17 = vsub.f32 %v757_v21, %v1511_v27  ;;  %v1368_v21 = vadd.f32 %v2700_v47, %v2527_v23  ;;  %v1365_v23 = vadd.f32 %v2700_v47, %v2511_v13 }
 0x197   :  { %v1182_v37 = vmax.f32 %v1105_v35, 0.0  ;;  %2018 = vmatpush.xpose.msk.msrb.mxu1 %vm442_vm1, %v1564_v36  ;;  %v349_v40 = vpop.f32.mrf.mxu0  ;;  %v1380_v35 = vadd.f32 %v2700_v47, %v2591_v5  ;;  %v756_v36 = vmax.f32 %v629_v19, 0.0 }
 0x198   :  { %v350_v42 = vadd.f32 %v2260_v38, %v349_v40  ;;  %v1505_v1 = vmax.f32 %v1368_v21, 0.0 }
 0x199   :  { %2002 = vmatmul.msk.f32.gmra.mxu3 %vm442_vm1, %v1182_v37  ;;  %v2734_v50 = vpop.f32.mrf.mxu1  ;;  %v1510_v37 = vmax.f32 %v1383_v29, 0.0  ;;  %v1509_v5 = vmax.f32 %v1380_v35, 0.0 }
 0x19a   :  { %v425_v55 = vmax.f32 %v350_v42, 0.0  ;;  %v623_v42 = vadd.f32 %v2700_v47, %v2554_v41 }
 0x19b   :  { %2019 = vmatpush.xpose.msk.msrb.mxu1 %vm442_vm1, %v1563_v9 }
 0x19c   :  { %v1107_v39 = vpop.f32.mrf.mxu2  ;;  %v2739_v61 = vpop.f32.mrf.mxu3  ;;  %1907 = vmatmul.msk.f32.gmra.mxu1 %vm442_vm1, %v425_v55  ;;  %v1558_v55 = vsub.f32 %v756_v36, %v1510_v37  ;;  %v754_v59 = vmax.f32 %v623_v42, 0.0 }
 0x19d   :  { %v1108_v63 = vadd.f32 %v2260_v38, %v1107_v39 }
 0x19f   :  { %v1183_v4 = vmax.f32 %v1108_v63, 0.0  ;;  %2020 = vmatpush.xpose.msk.msrb.mxu1 %vm442_vm1, %v1562_v2  ;;  %v352_v7 = vpop.f32.mrf.mxu0  ;;  %v1557_v63 = vsub.f32 %v755_v46, %v1509_v5  ;;  %v1504_v46 = vmax.f32 %v1365_v23, 0.0  ;;  %v605_v5 = vadd.f32 %v2700_v47, %v2460_v45 }
 0x1a0   :  { %v353_v8 = vadd.f32 %v2260_v38, %v352_v7  ;;  %v617_v7 = vadd.f32 %v2700_v47, %v2522_v20  ;;  %v614_v20 = vadd.f32 %v2700_v47, %v2506_v10 }
 0x1a1   :  { %2003 = vmatmul.msk.f32.gmra.mxu3 %vm442_vm1, %v1183_v4  ;;  %v2752_v16 = vpop.f32.mrf.mxu1  ;;  %v748_v45 = vmax.f32 %v605_v5, 0.0 }
 0x1a2   :  { %v426_v18 = vmax.f32 %v353_v8, 0.0 }
 0x1a3   :  { %2021 = vmatpush.xpose.msk.msrb.mxu1 %vm442_vm1, %v1561_v43 }
 0x1a4   :  { %v1110_v14 = vpop.f32.mrf.mxu2  ;;  %v2757_v22 = vpop.f32.mrf.mxu3  ;;  %1908 = vmatmul.msk.f32.gmra.mxu1 %vm442_vm1, %v426_v18 }
 0x1a5   :  { %v1111_v28 = vadd.f32 %v2260_v38, %v1110_v14  ;;  %v752_v14 = vmax.f32 %v617_v7, 0.0 }
 0x1a7   :  { %v1184_v32 = vmax.f32 %v1111_v28, 0.0  ;;  %2022 = vmatpush.xpose.msk.msrb.mxu1 %vm442_vm1, %v1560_v31  ;;  %v355_v25 = vpop.f32.mrf.mxu0  ;;  %v611_v31 = vadd.f32 %v2700_v47, %v2490_v0  ;;  %v608_v0 = vadd.f32 %v2700_v47, %v2474_v54 }
 0x1a8   :  { %v356_v34 = vadd.f32 %v2260_v38, %v355_v25  ;;  %v1377_v38 = vadd.f32 %v2700_v47, %v2575_v56  ;;  %v1374_v56 = vadd.f32 %v2700_v47, %v2559_v44  ;;  %v1371_v44 = vadd.f32 %v2700_v47, %v2543_v33 }
 0x1a9   :  { %2004 = vmatmul.msk.f32.gmra.mxu3 %vm442_vm1, %v1184_v32  ;;  %v2770_v40 = vpop.f32.mrf.mxu1  ;;  %v751_v32 = vmax.f32 %v614_v20, 0.0  ;;  %v750_v42 = vmax.f32 %v611_v31, 0.0 }
 0x1aa   :  { %v427_v53 = vmax.f32 %v356_v34, 0.0  ;;  %v1508_v62 = vmax.f32 %v1377_v38, 0.0  ;;  %v1507_v11 = vmax.f32 %v1374_v56, 0.0  ;;  %v1506_v29 = vmax.f32 %v1371_v44, 0.0 }
 0x1ab   :  { %2023 = vmatpush.xpose.msk.msrb.mxu1 %vm442_vm1, %v1559_v17  ;;  %v1553_v13 = vsub.f32 %v751_v32, %v1505_v1  ;;  %v1552_v60 = vsub.f32 %v750_v42, %v1504_v46 }
 0x1ac   :  { %v1113_v52 = vpop.f32.mrf.mxu2  ;;  %v2775_v48 = vpop.f32.mrf.mxu3  ;;  %1909 = vmatmul.msk.f32.gmra.mxu1 %vm442_vm1, %v427_v53  ;;  %v1556_v15 = vsub.f32 %v754_v59, %v1508_v62  ;;  %v1555_v33 = vsub.f32 %v753_v26, %v1507_v11  ;;  %v1554_v35 = vsub.f32 %v752_v14, %v1506_v29  ;;  %v1362_v53 = vadd.f32 %v2700_v47, %v2495_v3 }
 0x1ad   :  { %v1114_v9 = vadd.f32 %v2783_v49, %v1113_v52  ;;  %v1359_v3 = vadd.f32 %v2700_v47, %v2479_v57 }
 0x1af   :  { %v1185_v58 = vmax.f32 %v1114_v9, 0.0  ;;  %2024 = vmatpush.xpose.msk.msrb.mxu1 %vm442_vm1, %v1558_v55  ;;  %v358_v41 = vpop.f32.mrf.mxu0  ;;  %v749_v9 = vmax.f32 %v608_v0, 0.0  ;;  %v1502_v62 = vmax.f32 %v1359_v3, 0.0 }
 0x1b0   :  { %v359_v39 = vadd.f32 %v2783_v49, %v358_v41 }
 0x1b1   :  { %2005 = vmatmul.msk.f32.gmra.mxu3 %vm442_vm1, %v1185_v58  ;;  %v2793_v2 = vpop.f32.mrf.mxu1  ;;  %v1503_v58 = vmax.f32 %v1362_v53, 0.0  ;;  %v1550_v44 = vsub.f32 %v748_v45, %v1502_v62 }
 0x1b2   :  { %v428_v4 = vmax.f32 %v359_v39, 0.0 }
 0x1b3   :  { %2025 = vmatpush.xpose.msk.msrb.mxu1 %vm442_vm1, %v1557_v63  ;;  %v1551_v63 = vsub.f32 %v749_v9, %v1503_v58 }
 0x1b4   :  { %v1116_v30 = vpop.f32.mrf.mxu2  ;;  %v2798_v8 = vpop.f32.mrf.mxu3  ;;  %1910 = vmatmul.msk.f32.gmra.mxu1 %vm442_vm1, %v428_v4 }
 0x1b5   :  { %v1117_v12 = vadd.f32 %v2783_v49, %v1116_v30 }
 0x1b7   :  { %v1186_v43 = vmax.f32 %v1117_v12, 0.0  ;;  %2026 = vmatpush.xpose.msk.msrb.mxu1 %vm442_vm1, %v1556_v15  ;;  %v361_v18 = vpop.f32.mrf.mxu0 }
 0x1b8   :  { %v362_v19 = vadd.f32 %v2783_v49, %v361_v18 }
 0x1b9   :  { %2006 = vmatmul.msk.f32.gmra.mxu3 %vm442_vm1, %v1186_v43  ;;  %v2811_v27 = vpop.f32.mrf.mxu1 }
 0x1ba   :  { %v429_v28 = vmax.f32 %v362_v19, 0.0 }
 0x1bb   :  { %2027 = vmatpush.xpose.msk.msrb.mxu1 %vm442_vm1, %v1555_v33 }
 0x1bc   :  { %v1119_v10 = vpop.f32.mrf.mxu2  ;;  %v2816_v25 = vpop.f32.mrf.mxu3  ;;  %1911 = vmatmul.msk.f32.gmra.mxu1 %vm442_vm1, %v429_v28 }
 0x1bd   :  { %v1120_v34 = vadd.f32 %v2783_v49, %v1119_v10 }
 0x1bf   :  { %v1187_v36 = vmax.f32 %v1120_v34, 0.0  ;;  %2028 = vmatpush.xpose.msk.msrb.mxu1 %vm442_vm1, %v1554_v35  ;;  %v364_v37 = vpop.f32.mrf.mxu0 }
 0x1c0   :  { %v365_v17 = vadd.f32 %v2783_v49, %v364_v37 }
 0x1c1   :  { %2007 = vmatmul.msk.f32.gmra.mxu3 %vm442_vm1, %v1187_v36  ;;  %v2829_v52 = vpop.f32.mrf.mxu1 }
 0x1c2   :  { %v430_v38 = vmax.f32 %v365_v17, 0.0 }
 0x1c3   :  { %2029 = vmatpush.xpose.msk.msrb.mxu1 %vm442_vm1, %v1553_v13 }
 0x1c4   :  { %v1122_v54 = vpop.f32.mrf.mxu2  ;;  %v2834_v55 = vpop.f32.mrf.mxu3  ;;  %1912 = vmatmul.msk.f32.gmra.mxu1 %vm442_vm1, %v430_v38 }
 0x1c5   :  { %v1123_v41 = vadd.f32 %v2783_v49, %v1122_v54 }
 0x1c7   :  { %v1188_v39 = vmax.f32 %v1123_v41, 0.0  ;;  %2030 = vmatpush.xpose.msk.msrb.mxu1 %vm442_vm1, %v1552_v60  ;;  %v367_v56 = vpop.f32.mrf.mxu0 }
 0x1c8   :  { %v368_v59 = vadd.f32 %v2783_v49, %v367_v56 }
 0x1c9   :  { %2008 = vmatmul.msk.f32.gmra.mxu3 %vm442_vm1, %v1188_v39  ;;  %v2843_v4 = vpop.f32.mrf.mxu1 }
 0x1ca   :  { %v431_v7 = vmax.f32 %v368_v59, 0.0 }
 0x1cb   :  { %2031 = vmatpush.xpose.msk.msrb.mxu1 %vm442_vm1, %v1551_v63 }
 0x1cc   :  { %v1125_v57 = vpop.f32.mrf.mxu2  ;;  %v2846_v26 = vpop.f32.mrf.mxu3  ;;  %1913 = vmatmul.msk.f32.gmra.mxu1 %vm442_vm1, %v431_v7 }
 0x1cd   :  { %v1126_v30 = vadd.f32 %v2783_v49, %v1125_v57 }
 0x1cf   :  { %v1189_v11 = vmax.f32 %v1126_v30, 0.0  ;;  %2032 = vmatpush.xpose.msk.msrb.mxu1 %vm442_vm1, %v1550_v44  ;;  %v370_v12 = vpop.f32.mrf.mxu0 }
 0x1d0   :  { %v371_v15 = vadd.f32 %v2783_v49, %v370_v12 }
 0x1d1   :  { %2009 = vmatmul.msk.f32.gmra.mxu3 %vm442_vm1, %v1189_v11  ;;  %v679_v43 = vpop.f32.mrf.mxu1 }
 0x1d2   :  { %v432_v18 = vmax.f32 %v371_v15, 0.0  ;;  %v680_v28 = vadd.f32 %v2700_v47, %v679_v43 }
 0x1d4   :  { %v1128_v20 = vpop.f32.mrf.mxu2  ;;  %v2853_v19 = vpop.f32.mrf.mxu3  ;;  %1914 = vmatmul.msk.f32.gmra.mxu1 %vm442_vm1, %v432_v18  ;;  %v773_v1 = vmax.f32 %v680_v28, 0.0 }
 0x1d5   :  { %v1129_v21 = vadd.f32 %v2783_v49, %v1128_v20 }
 0x1d7   :  { %v1190_v14 = vmax.f32 %v1129_v21, 0.0  ;;  %v373_v29 = vpop.f32.mrf.mxu0 }
 0x1d8   :  { %v374_v33 = vadd.f32 %v2783_v49, %v373_v29 }
 0x1d9   :  { %2010 = vmatmul.msk.f32.gmra.mxu3 %vm442_vm1, %v1190_v14  ;;  %v2860_v31 = vpop.f32.mrf.mxu1 }
 0x1da   :  { %v433_v32 = vmax.f32 %v374_v33, 0.0 }
 0x1dc   :  { %v1131_v10 = vpop.f32.mrf.mxu2  ;;  %v1433_v23 = vpop.f32.mrf.mxu3  ;;  %1915 = vmatmul.msk.f32.gmra.mxu1 %vm442_vm1, %v433_v32 }
 0x1dd   :  { %v1132_v34 = vadd.f32 %v2783_v49, %v1131_v10  ;;  %v1434_v35 = vadd.f32 %v2700_v47, %v1433_v23 }
 0x1df   :  { %v1191_v36 = vmax.f32 %v1132_v34, 0.0  ;;  %v1527_v37 = vmax.f32 %v1434_v35, 0.0  ;;  %v376_v0 = vpop.f32.mrf.mxu0 }
 0x1e0   :  { %v377_v17 = vadd.f32 %v2783_v49, %v376_v0 }
 0x1e1   :  { %v2866_v53 = vsub.f32 %v773_v1, %v1527_v37  ;;  %2011 = vmatmul.msk.f32.gmra.mxu3 %vm442_vm1, %v1191_v36  ;;  %v2869_v42 = vpop.f32.mrf.mxu1 }
 0x1e2   :  { %v434_v46 = vmax.f32 %v377_v17, 0.0 }
 0x1e4   :  { %v1134_v13 = vpop.f32.mrf.mxu2  ;;  %v2871_v38 = vpop.f32.mrf.mxu3  ;;  %1916 = vmatmul.msk.f32.gmra.mxu1 %vm442_vm1, %v434_v46 }
 0x1e5   :  { %v1135_v5 = vadd.f32 %v2783_v49, %v1134_v13 }
 0x1e7   :  { %v1192_v9 = vmax.f32 %v1135_v5, 0.0  ;;  %v379_v54 = vpop.f32.mrf.mxu0 }
 0x1e8   :  { %v380_v3 = vadd.f32 %v2783_v49, %v379_v54 }
 0x1e9   :  { %2012 = vmatmul.msk.f32.gmra.mxu3 %vm442_vm1, %v1192_v9  ;;  %v688_v58 = vpop.f32.mrf.mxu1 }
 0x1ea   :  { %v435_v41 = vmax.f32 %v380_v3, 0.0 }
 0x1ec   :  { %v1137_v60 = vpop.f32.mrf.mxu2  ;;  %v1439_v39 = vpop.f32.mrf.mxu3  ;;  %1917 = vmatmul.msk.f32.gmra.mxu1 %vm442_vm1, %v435_v41 }
 0x1ed   :  { %v1138_v56 = vadd.f32 %v2783_v49, %v1137_v60 }
 0x1ef   :  { %v1193_v59 = vmax.f32 %v1138_v56, 0.0  ;;  %v382_v45 = vpop.f32.mrf.mxu0 }
 0x1f0   :  { %v383_v62 = vadd.f32 %v2783_v49, %v382_v45  ;;  %v689_v45 = vadd.f32 %v2700_v47, %v688_v58 }
 0x1f1   :  { %2013 = vmatmul.msk.f32.gmra.mxu3 %vm442_vm1, %v1193_v59  ;;  %v691_v63 = vpop.f32.mrf.mxu1 }
 0x1f2   :  { %v436_v7 = vmax.f32 %v383_v62, 0.0  ;;  %v692_v54 = vadd.f32 %v2700_v47, %v691_v63 }
 0x1f4   :  { %v1140_v57 = vpop.f32.mrf.mxu2  ;;  %v1442_v30 = vpop.f32.mrf.mxu3  ;;  %1918 = vmatmul.msk.f32.gmra.mxu1 %vm442_vm1, %v436_v7  ;;  %v777_v7 = vmax.f32 %v692_v54, 0.0 }
 0x1f5   :  { %v1141_v44 = vadd.f32 %v2783_v49, %v1140_v57  ;;  %v1443_v62 = vadd.f32 %v2700_v47, %v1442_v30 }
 0x1f7   :  { %v1194_v11 = vmax.f32 %v1141_v44, 0.0  ;;  %v385_v12 = vpop.f32.mrf.mxu0 }
 0x1f8   :  { %v386_v15 = vadd.f32 %v2783_v49, %v385_v12 }
 0x1f9   :  { %2014 = vmatmul.msk.f32.gmra.mxu3 %vm442_vm1, %v1194_v11  ;;  %v694_v43 = vpop.f32.mrf.mxu1 }
 0x1fa   :  { %v437_v18 = vmax.f32 %v386_v15, 0.0  ;;  %v695_v0 = vadd.f32 %v2700_v47, %v694_v43  ;;  %v686_v43 = vadd.f32 %v2700_v47, %v2869_v42 }
 0x1fc   :  { %v1143_v20 = vpop.f32.mrf.mxu2  ;;  %v1445_v21 = vpop.f32.mrf.mxu3  ;;  %1919 = vmatmul.msk.f32.gmra.mxu1 %vm442_vm1, %v437_v18  ;;  %v778_v3 = vmax.f32 %v695_v0, 0.0  ;;  %v1440_v18 = vadd.f32 %v2700_v47, %v1439_v39 }
 0x1fd   :  { %v1144_v14 = vadd.f32 %v2783_v49, %v1143_v20  ;;  %v776_v20 = vmax.f32 %v689_v45, 0.0  ;;  %v671_v45 = vadd.f32 %v2700_v47, %v2811_v27 }
 0x1ff   :  { %v1195_v29 = vmax.f32 %v1144_v14, 0.0  ;;  %v388_v33 = vpop.f32.mrf.mxu0  ;;  %v770_v27 = vmax.f32 %v671_v45, 0.0 }
 0x200   :  { %v389_v28 = vadd.f32 %v2783_v49, %v388_v33  ;;  %v683_v33 = vadd.f32 %v2700_v47, %v2860_v31 }
 0x201   :  { %2015 = vmatmul.msk.f32.gmra.mxu3 %vm442_vm1, %v1195_v29  ;;  %v697_v32 = vpop.f32.mrf.mxu1 }
 0x202   :  { %v438_v10 = vmax.f32 %v389_v28, 0.0  ;;  %v698_v36 = vadd.f32 %v2700_v47, %v697_v32  ;;  %v1437_v28 = vadd.f32 %v2700_v47, %v2871_v38  ;;  %v775_v32 = vmax.f32 %v686_v43, 0.0 }
 0x203   :  { %v677_v38 = vadd.f32 %v2700_v47, %v2843_v4 }
 0x204   :  { %v1146_v23 = vpop.f32.mrf.mxu2  ;;  %v1448_v1 = vpop.f32.mrf.mxu3  ;;  %1920 = vmatmul.msk.f32.gmra.mxu1 %vm442_vm1, %v438_v10  ;;  %v779_v13 = vmax.f32 %v698_v36, 0.0  ;;  %v1529_v10 = vmax.f32 %v1440_v18, 0.0  ;;  %v1528_v36 = vmax.f32 %v1437_v28, 0.0 }
 0x205   :  { %v1147_v34 = vadd.f32 %v2783_v49, %v1146_v23  ;;  %v1449_v46 = vadd.f32 %v2700_v47, %v1448_v1  ;;  %v1446_v49 = vadd.f32 %v2700_v47, %v1445_v21  ;;  %v1530_v21 = vmax.f32 %v1443_v62, 0.0 }
 0x206   :  { %v1425_v62 = vadd.f32 %v2700_v47, %v2834_v55 }
 0x207   :  { %v1196_v35 = vmax.f32 %v1147_v34, 0.0  ;;  %v1532_v41 = vmax.f32 %v1449_v46, 0.0  ;;  %v1531_v44 = vmax.f32 %v1446_v49, 0.0  ;;  %v1578_v39 = vsub.f32 %v776_v20, %v1530_v21 }
 0x208   :  { %v674_v49 = vadd.f32 %v2700_v47, %v2829_v52  ;;  %v665_v21 = vadd.f32 %v2700_v47, %v2770_v40 }
 0x209   :  { %2016 = vmatmul.msk.f32.gmra.mxu3 %vm442_vm1, %v1196_v35  ;;  %v700_v37 = vpop.f32.mrf.mxu1  ;;  %v1580_v11 = vsub.f32 %v778_v3, %v1532_v41  ;;  %v1579_v58 = vsub.f32 %v777_v7, %v1531_v44  ;;  %v774_v35 = vmax.f32 %v683_v33, 0.0  ;;  %v772_v41 = vmax.f32 %v677_v38, 0.0 }
 0x20a   :  { %v701_v56 = vadd.f32 %v2700_v47, %v700_v37  ;;  %v1577_v37 = vsub.f32 %v775_v32, %v1529_v10  ;;  %v771_v52 = vmax.f32 %v674_v49, 0.0  ;;  %v1416_v10 = vadd.f32 %v2700_v47, %v2775_v48 }
 0x20b   :  { %v768_v40 = vmax.f32 %v665_v21, 0.0 }
 0x20c   :  { %v1451_v17 = vpop.f32.mrf.mxu3  ;;  %v780_v12 = vmax.f32 %v701_v56, 0.0 }
 0x20d   :  { %v1452_v5 = vadd.f32 %v2700_v47, %v1451_v17 }
 0x20f   :  { %v1533_v9 = vmax.f32 %v1452_v5, 0.0  ;;  %v1576_v5 = vsub.f32 %v774_v35, %v1528_v36  ;;  %v659_v35 = vadd.f32 %v2700_v47, %v2734_v50  ;;  %v1413_v36 = vadd.f32 %v2700_v47, %v2757_v22 }
 0x211   :  { %v1581_v60 = vsub.f32 %v779_v13, %v1533_v9  ;;  %v703_v59 = vpop.f32.mrf.mxu1  ;;  %v1431_v13 = vadd.f32 %v2700_v47, %v2853_v19  ;;  %v766_v50 = vmax.f32 %v659_v35, 0.0 }
 0x212   :  { %v704_v30 = vadd.f32 %v2700_v47, %v703_v59 }
 0x213   :  { %2034 = vmatpush.xpose.msk.msrb.mxu3 %vm442_vm1, %v1581_v60  ;;  %v1428_v60 = vadd.f32 %v2700_v47, %v2846_v26  ;;  %v1526_v56 = vmax.f32 %v1431_v13, 0.0  ;;  %v656_v13 = vadd.f32 %v2700_v47, %v2716_v24 }
 0x214   :  { %v1454_v57 = vpop.f32.mrf.mxu3  ;;  %v781_v23 = vmax.f32 %v704_v30, 0.0 }
 0x215   :  { %v1455_v63 = vadd.f32 %v2700_v47, %v1454_v57  ;;  %v1525_v57 = vmax.f32 %v1428_v60, 0.0  ;;  %v1407_v60 = vadd.f32 %v2700_v47, %v2721_v6  ;;  %v765_v24 = vmax.f32 %v656_v13, 0.0 }
 0x217   :  { %v1534_v15 = vmax.f32 %v1455_v63, 0.0  ;;  %2035 = vmatpush.xpose.msk.msrb.mxu3 %vm442_vm1, %v1580_v11  ;;  %v1574_v11 = vsub.f32 %v772_v41, %v1526_v56  ;;  %v668_v63 = vadd.f32 %v2700_v47, %v2793_v2  ;;  %v1573_v55 = vsub.f32 %v771_v52, %v1525_v57 }
 0x218   :  { %v653_v41 = vadd.f32 %v2700_v47, %v2703_v51 }
 0x219   :  { %v2907_v14 = vsub.f32 %v780_v12, %v1534_v15  ;;  %v706_v29 = vpop.f32.mrf.mxu1  ;;  %v1524_v15 = vmax.f32 %v1425_v62, 0.0  ;;  %v769_v2 = vmax.f32 %v668_v63, 0.0 }
 0x21a   :  { %v707_v31 = vadd.f32 %v2700_v47, %v706_v29  ;;  %v764_v52 = vmax.f32 %v653_v41, 0.0 }
 0x21b   :  { %2036 = vmatpush.xpose.msk.msrb.mxu3 %vm442_vm1, %v1579_v58  ;;  %v1419_v58 = vadd.f32 %v2700_v47, %v2798_v8  ;;  %v1572_v28 = vsub.f32 %v770_v27, %v1524_v15 }
 0x21c   :  { %v1457_v42 = vpop.f32.mrf.mxu3  ;;  %v782_v9 = vmax.f32 %v707_v31, 0.0  ;;  %v1521_v31 = vmax.f32 %v1416_v10, 0.0 }
 0x21d   :  { %v1458_v1 = vadd.f32 %v2700_v47, %v1457_v42  ;;  %v662_v42 = vadd.f32 %v2700_v47, %v2752_v16 }
 0x21f   :  { %v1535_v34 = vmax.f32 %v1458_v1, 0.0  ;;  %2037 = vmatpush.xpose.msk.msrb.mxu3 %vm442_vm1, %v1578_v39  ;;  %v1522_v39 = vmax.f32 %v1419_v58, 0.0  ;;  %v767_v16 = vmax.f32 %v662_v42, 0.0 }
 0x221   :  { %v2917_v0 = vsub.f32 %v781_v23, %v1535_v34  ;;  %v709_v17 = vpop.f32.mrf.mxu1  ;;  %v1570_v38 = vsub.f32 %v768_v40, %v1522_v39  ;;  %v1569_v22 = vsub.f32 %v767_v16, %v1521_v31 }
 0x222   :  { %v710_v59 = vadd.f32 %v2700_v47, %v709_v17 }
 0x223   :  { %2038 = vmatpush.xpose.msk.msrb.mxu3 %vm442_vm1, %v1577_v37 }
 0x224   :  { %v1460_v46 = vpop.f32.mrf.mxu3  ;;  %v783_v44 = vmax.f32 %v710_v59, 0.0 }
 0x225   :  { %v1461_v54 = vadd.f32 %v2700_v47, %v1460_v46 }
 0x227   :  { %v1536_v3 = vmax.f32 %v1461_v54, 0.0  ;;  %2039 = vmatpush.xpose.msk.msrb.mxu3 %vm442_vm1, %v1576_v5  ;;  %v1410_v5 = vadd.f32 %v2700_v47, %v2739_v61 }
 0x229   :  { %v2931_v4 = vsub.f32 %v782_v9, %v1536_v3  ;;  %v712_v19 = vpop.f32.mrf.mxu1  ;;  %v1520_v9 = vmax.f32 %v1413_v36, 0.0  ;;  %v1519_v59 = vmax.f32 %v1410_v5, 0.0 }
 0x22a   :  { %v713_v18 = vadd.f32 %v2700_v47, %v712_v19 }
 0x22b   :  { %2040 = vmatpush.xpose.msk.msrb.mxu3 %vm442_vm1, %v2866_v53  ;;  %v1422_v53 = vadd.f32 %v2700_v47, %v2816_v25  ;;  %v1568_v45 = vsub.f32 %v766_v50, %v1520_v9 }
 0x22c   :  { %v1463_v7 = vpop.f32.mrf.mxu3  ;;  %v784_v25 = vmax.f32 %v713_v18, 0.0 }
 0x22d   :  { %v1464_v26 = vadd.f32 %v2700_v47, %v1463_v7  ;;  %v1523_v29 = vmax.f32 %v1422_v53, 0.0  ;;  %v1518_v7 = vmax.f32 %v1407_v60, 0.0 }
 0x22f   :  { %v1537_v12 = vmax.f32 %v1464_v26, 0.0  ;;  %2041 = vmatpush.xpose.msk.msrb.mxu3 %vm442_vm1, %v1574_v11  ;;  %v1571_v8 = vsub.f32 %v769_v2, %v1523_v29  ;;  %v1566_v63 = vsub.f32 %v764_v52, %v1518_v7 }
 0x231   :  { %v2946_v43 = vsub.f32 %v783_v44, %v1537_v12  ;;  %v715_v20 = vpop.f32.mrf.mxu1  ;;  %v1567_v44 = vsub.f32 %v765_v24, %v1519_v59 }
 0x232   :  { %v716_v1 = vadd.f32 %v2700_v47, %v715_v20 }
 0x233   :  { %2042 = vmatpush.xpose.msk.msrb.mxu3 %vm442_vm1, %v1573_v55 }
 0x234   :  { %v1466_v30 = vpop.f32.mrf.mxu3  ;;  %v785_v48 = vmax.f32 %v716_v1, 0.0 }
 0x235   :  { %v1467_v33 = vadd.f32 %v2700_v47, %v1466_v30 }
 0x237   :  { %v1538_v32 = vmax.f32 %v1467_v33, 0.0  ;;  %2043 = vmatpush.xpose.msk.msrb.mxu3 %vm442_vm1, %v1572_v28 }
 0x239   :  { %v2960_v23 = vsub.f32 %v784_v25, %v1538_v32  ;;  %v718_v34 = vpop.f32.mrf.mxu1 }
 0x23a   :  { %v719_v3 = vadd.f32 %v2700_v47, %v718_v34 }
 0x23b   :  { %2044 = vmatpush.xpose.msk.msrb.mxu3 %vm442_vm1, %v1571_v8 }
 0x23c   :  { %v1469_v37 = vpop.f32.mrf.mxu3  ;;  %v786_v61 = vmax.f32 %v719_v3, 0.0 }
 0x23d   :  { %v1470_v17 = vadd.f32 %v2700_v47, %v1469_v37 }
 0x23f   :  { %v1539_v46 = vmax.f32 %v1470_v17, 0.0  ;;  %2045 = vmatpush.xpose.msk.msrb.mxu3 %vm442_vm1, %v1570_v38 }
 0x241   :  { %v2974_v54 = vsub.f32 %v785_v48, %v1539_v46  ;;  %v721_v49 = vpop.f32.mrf.mxu1 }
 0x242   :  { %v722_v51 = vadd.f32 %v2700_v47, %v721_v49 }
 0x243   :  { %2046 = vmatpush.xpose.msk.msrb.mxu3 %vm442_vm1, %v1569_v22 }
 0x244   :  { %v1472_v56 = vpop.f32.mrf.mxu3  ;;  %v787_v11 = vmax.f32 %v722_v51, 0.0 }
 0x245   :  { %v1473_v19 = vadd.f32 %v2700_v47, %v1472_v56 }
 0x247   :  { %v1540_v62 = vmax.f32 %v1473_v19, 0.0  ;;  %2047 = vmatpush.xpose.msk.msrb.mxu3 %vm442_vm1, %v1568_v45 }
 0x249   :  { %v2984_v57 = vsub.f32 %v786_v61, %v1540_v62  ;;  %v724_v26 = vpop.f32.mrf.mxu1 }
 0x24a   :  { %v725_v15 = vadd.f32 %v2700_v47, %v724_v26 }
 0x24b   :  { %2048 = vmatpush.xpose.msk.msrb.mxu3 %vm442_vm1, %v1567_v44 }
 0x24c   :  { %v1475_v6 = vpop.f32.mrf.mxu3  ;;  %v788_v20 = vmax.f32 %v725_v15, 0.0  ;;  %v1598_v15 = vld [vmem:[%s3047_s6] sm:$0xff] }
 0x24d   :  { %v1476_v12 = vadd.f32 %v2700_v47, %v1475_v6  ;;  %2033 = vmatmul.msk.f32.vlgmr.msrb.gmra.mxu1 %vm442_vm1, %v1598_v15 }
 0x24f   :  { %v1541_v53 = vmax.f32 %v1476_v12, 0.0  ;;  %2049 = vmatpush.xpose.msk.msrb.mxu3 %vm442_vm1, %v1566_v63 }
 0x251   :  { %v2990_v27 = vsub.f32 %v787_v11, %v1541_v53  ;;  %v727_v55 = vpop.f32.mrf.mxu1 }
 0x252   :  { %v728_v30 = vadd.f32 %v2700_v47, %v727_v55  ;;  %2050 = vmatmul.msk.f32.vlgmr.msrb.gmra.mxu3 %vm442_vm1, %v1598_v15 }
 0x254   :  { %v1478_v18 = vpop.f32.mrf.mxu3  ;;  %v789_v33 = vmax.f32 %v728_v30, 0.0 }
 0x255   :  { %v1479_v21 = vadd.f32 %v2700_v47, %v1478_v18 }
 0x257   :  { %v1542_v58 = vmax.f32 %v1479_v21, 0.0 }
 0x259   :  { %v1590_v2 = vsub.f32 %v788_v20, %v1542_v58  ;;  %v730_v29 = vpop.f32.mrf.mxu1 }
 0x25a   :  { %v731_v7 = vadd.f32 %v2700_v47, %v730_v29 }
 0x25c   :  { %v1481_v25 = vpop.f32.mrf.mxu3  ;;  %v790_v11 = vmax.f32 %v731_v7, 0.0 }
 0x25d   :  { %v1482_v28 = vadd.f32 %v2700_v47, %v1481_v25 }
 0x25f   :  { %v1543_v32 = vmax.f32 %v1482_v28, 0.0 }
 0x261   :  { %v1591_v42 = vsub.f32 %v789_v33, %v1543_v32  ;;  %v733_v10 = vpop.f32.mrf.mxu1 }
 0x262   :  { %v734_v61 = vadd.f32 %v2700_v47, %v733_v10 }
 0x264   :  { %v1484_v40 = vpop.f32.mrf.mxu3  ;;  %v791_v51 = vmax.f32 %v734_v61, 0.0 }
 0x265   :  { %v1485_v44 = vadd.f32 %v2700_v47, %v1484_v40 }
 0x267   :  { %v1544_v12 = vmax.f32 %v1485_v44, 0.0 }
 0x269   :  { %v736_v39 = vpop.f32.mrf.mxu1  ;;  %v1592_v53 = vsub.f32 %v790_v11, %v1544_v12 }
 0x26a   :  { %v737_v41 = vadd.f32 %v2700_v47, %v736_v39 }
 0x26c   :  { %v1487_v8 = vpop.f32.mrf.mxu3  ;;  %v792_v45 = vmax.f32 %v737_v41, 0.0 }
 0x26d   :  { %v1488_v19 = vadd.f32 %v2700_v47, %v1487_v8 }
 0x26f   :  { %v1545_v26 = vmax.f32 %v1488_v19, 0.0 }
 0x271   :  { %v739_v1 = vpop.f32.mrf.mxu1  ;;  %v1593_v63 = vsub.f32 %v791_v51, %v1545_v26 }
 0x272   :  { %v740_v50 = vadd.f32 %v2700_v47, %v739_v1 }
 0x274   :  { %v1490_v34 = vpop.f32.mrf.mxu3  ;;  %v793_v24 = vmax.f32 %v740_v50, 0.0 }
 0x275   :  { %v1491_v60 = vadd.f32 %v2700_v47, %v1490_v34 }
 0x277   :  { %v1546_v62 = vmax.f32 %v1491_v60, 0.0 }
 0x279   :  { %v742_v36 = vpop.f32.mrf.mxu1  ;;  %v1594_v6 = vsub.f32 %v792_v45, %v1546_v62 }
 0x27a   :  { %v743_v17 = vadd.f32 %v2700_v47, %v742_v36 }
 0x27c   :  { %v1493_v35 = vpop.f32.mrf.mxu3  ;;  %v794_v22 = vmax.f32 %v743_v17, 0.0 }
 0x27d   :  { %v1494_v9 = vadd.f32 %v2700_v47, %v1493_v35 }
 0x27f   :  { %v1547_v56 = vmax.f32 %v1494_v9, 0.0 }
 0x281   :  { %v745_v37 = vpop.f32.mrf.mxu1  ;;  %v1595_v52 = vsub.f32 %v793_v24, %v1547_v56 }
 0x282   :  { %v746_v31 = vadd.f32 %v2700_v47, %v745_v37 }
 0x284   :  { %v1496_v16 = vpop.f32.mrf.mxu3  ;;  %v795_v46 = vmax.f32 %v746_v31, 0.0 }
 0x285   :  { %v1497_v38 = vadd.f32 %v2700_v47, %v1496_v16 }
 0x287   :  { %v1548_v3 = vmax.f32 %v1497_v38, 0.0 }
 0x289   :  { %v1596_v59 = vsub.f32 %v794_v22, %v1548_v3 }
 0x28c   :  { %v1499_v48 = vpop.f32.mrf.mxu3 }
 0x28d   :  { %v1500_v13 = vadd.f32 %v2700_v47, %v1499_v48 }
 0x28f   :  { %v1549_v5 = vmax.f32 %v1500_v13, 0.0 }
 0x291   :  { %v1597_v49 = vsub.f32 %v795_v46, %v1549_v5 }
 0x293   :  { %2051 = vmatpush.xpose.msk.msrb.mxu0 %vm442_vm1, %v1597_v49 }
 0x297   :  { %2052 = vmatpush.xpose.msk.msrb.mxu0 %vm442_vm1, %v1596_v59 }
 0x29b   :  { %2053 = vmatpush.xpose.msk.msrb.mxu0 %vm442_vm1, %v1595_v52 }
 0x29f   :  { %2054 = vmatpush.xpose.msk.msrb.mxu0 %vm442_vm1, %v1594_v6 }
 0x2a3   :  { %2055 = vmatpush.xpose.msk.msrb.mxu0 %vm442_vm1, %v1593_v63 }
 0x2a7   :  { %2056 = vmatpush.xpose.msk.msrb.mxu0 %vm442_vm1, %v1592_v53 }
 0x2ab   :  { %2057 = vmatpush.xpose.msk.msrb.mxu0 %vm442_vm1, %v1591_v42 }
 0x2af   :  { %2058 = vmatpush.xpose.msk.msrb.mxu0 %vm442_vm1, %v1590_v2 }
 0x2b3   :  { %2059 = vmatpush.xpose.msk.msrb.mxu0 %vm442_vm1, %v2990_v27  ;;  %v1816_v27 = vlaneseq }
 0x2b5   :  { %vm1818_vm4 = vcmp.lt.s32.totalorder %v1816_v27, 384 }
 0x2b7   :  { %2060 = vmatpush.xpose.msk.msrb.mxu0 %vm442_vm1, %v2984_v57 }
 0x2bb   :  { %2061 = vmatpush.xpose.msk.msrb.mxu0 %vm442_vm1, %v2974_v54 }
 0x2bf   :  { %2062 = vmatpush.xpose.msk.msrb.mxu0 %vm442_vm1, %v2960_v23 }
 0x2c3   :  { %2063 = vmatpush.xpose.msk.msrb.mxu0 %vm442_vm1, %v2946_v43 }
 0x2c7   :  { %2064 = vmatpush.xpose.msk.msrb.mxu0 %vm442_vm1, %v2931_v4 }
 0x2ca   :  { %v1763_v54 = vpop.f32.mrf.mxu1 }
 0x2cb   :  { %2065 = vmatpush.xpose.msk.msrb.mxu0 %vm442_vm1, %v2917_v0 }
 0x2cf   :  { %2066 = vmatpush.xpose.msk.msrb.mxu0 %vm442_vm1, %v2907_v14 }
 0x2d2   :  { %2067 = vmatmul.msk.f32.vlgmr.msrb.gmra.mxu0 %vm442_vm1, %v1598_v15 }
 0x2d5   :  { %v1783_v47 = vpop.f32.mrf.mxu3 }
 0x2d6   :  { %v1809_v57 = vrot.slane %v1783_v47, 7 }
 0x2d8   :  { %v1812_v55 = vsel %vm1811_vm2, %v1763_v54, %v1809_v57 }
 0x34f   :  { %v1803_v23 = vpop.f32.mrf.mxu0 }
 0x350   :  { %v1810_v43 = vrot.slane %v1803_v23, 6 }
 0x352   :  { %v1814_v18 = vsel %vm1813_vm3, %v1812_v55, %v1810_v43 }
 0x353   :  { %1820 = vst.msk [vmem:[%s3048_s7] sm:$0x7] %vm1818_vm4, %v1814_v18 }

</bundles_post_ra>
